<compile_context>
chip_gen: v7x
topology: tpu7x:2x2x1
jax: 0.10.0
libtpu: 0.0.40
codegen_flags: <defaults>
</compile_context>

<pallas_src>
import math
import functools

import jax
import jax.numpy as jnp
from jax import lax
from jax.experimental import pallas as pl
from jax.experimental.pallas import tpu as pltpu


def _softplus(x):
    # matches torch.nn.functional.softplus (threshold = 20)
    return jnp.where(x > 20.0, x, jnp.log(1.0 + jnp.exp(jnp.minimum(x, 20.0))))


def _round_up(x, m):
    return ((x + m - 1) // m) * m


def _choose_chunk(L, max_chunk=512):
    # The chunked path needs Lc % 128 == 0 (lane-clean u/dt/y tiles and clean group
    # count); otherwise fall back to a single full-length chunk per (b, k).
    if L % 128 == 0:
        c = min(max_chunk, L)
        c = (c // 128) * 128
        while L % c != 0:
            c -= 128
        return c
    return L


# ----------------------------------------------------------------------------
# Pallas kernel 1: selective scan
#   grid = (B, K, num_chunks); state h carried across the chunk axis in VMEM scratch
# ----------------------------------------------------------------------------
def _selective_scan_kernel(u_ref, dt_ref, bc_ref, A_ref, D_ref, bias_ref, y_ref,
                           h_ref, dtsp_ref, du_ref):
    # u_ref, dt_ref, y_ref : (1, 1, Lc, d)
    # bc_ref               : (1, 1, Lc//8, 2N, 8)  [..., 0:N, i] = B_t, [..., N:, i] = C_t
    #                        with t = 8*group + i
    # A_ref                : (1, N, d)   (= -exp(A_log) transposed, per direction)
    # D_ref, bias_ref      : (1, 1, d)
    # h_ref                : (N, d) f32 scratch, carried across the chunk grid axis
    # dtsp_ref, du_ref     : (Lc, d) f32 scratch (hoisted per-block precompute)
    Lc = u_ref.shape[2]
    d = u_ref.shape[3]
    N = A_ref.shape[1]
    G = 8  # time steps per unrolled group (one sublane tile)

    @pl.when(pl.program_id(2) == 0)
    def _():
        h_ref[...] = jnp.zeros_like(h_ref)

    A = A_ref[0]          # (N, d)
    Dp = D_ref[0]         # (1, d)
    bias = bias_ref[0]    # (1, d)

    # Hoisted out of the recurrence: vectorized over the whole (Lc, d) block.
    u_blk = u_ref[0, 0]                       # (Lc, d)
    dtsp = _softplus(dt_ref[0, 0] + bias)     # (Lc, d)
    dtsp_ref[...] = dtsp
    du_ref[...] = dtsp * u_blk

    row_id = lax.broadcasted_iota(jnp.int32, (G, 1), 0)   # (8, 1)

    def group(j, h):
        base = pl.multiple_of(j * G, G)
        dtsp8 = dtsp_ref[pl.ds(base, G), :]          # (8, d)
        du8 = du_ref[pl.ds(base, G), :]              # (8, d)
        u8 = u_ref[0, 0, pl.ds(base, G), :]          # (8, d)
        bc8 = bc_ref[0, 0, j]                        # (2N, 8)

        y8 = jnp.zeros((G, d), jnp.float32)
        for i in range(G):                           # unrolled by 8
            dA = jnp.exp(dtsp8[i:i + 1, :] * A)                       # (N, d)
            h = dA * h + bc8[:N, i:i + 1] * du8[i:i + 1, :]           # (N, d)
            y_i = jnp.sum(bc8[N:, i:i + 1] * h, axis=0, keepdims=True)  # (1, d)
            y8 = y8 + jnp.where(row_id == i, y_i, 0.0)
        # single dense (8, d) store per group
        y_ref[0, 0, pl.ds(base, G), :] = y8 + Dp * u8
        return h

    h_ref[...] = lax.fori_loop(0, Lc // G, group, h_ref[...])


def selective_scan_pallas(u, dt, A_t, bc, Dp, bias, *, max_chunk=512):
    # u, dt : (B, K, L, d) f32   (time on sublanes, channels on lanes)
    # A_t   : (K, N, d)
    # bc    : (B, K, 2N, L) f32  (B rows then C rows)
    # Dp, bias : (K, 1, d)
    B, K, L, d = u.shape
    N = A_t.shape[1]

    Lp = _round_up(L, 8)
    if Lp != L:
        # pad the sequence tail; padded steps produce y that is sliced off below and the
        # extra state updates happen after all real steps, so they are harmless.
        u = jnp.pad(u, ((0, 0), (0, 0), (0, Lp - L), (0, 0)))
        dt = jnp.pad(dt, ((0, 0), (0, 0), (0, Lp - L), (0, 0)))
        bc = jnp.pad(bc, ((0, 0), (0, 0), (0, 0), (0, Lp - L)))

    # repack B/C so each group of 8 time steps is one (2N, 8) tile
    bc5 = jnp.transpose(bc.reshape(B, K, 2 * N, Lp // 8, 8), (0, 1, 3, 2, 4))

    Lc = _choose_chunk(Lp, max_chunk)
    nc = Lp // Lc

    y = pl.pallas_call(
        _selective_scan_kernel,
        out_shape=jax.ShapeDtypeStruct((B, K, Lp, d), jnp.float32),
        grid_spec=pltpu.PrefetchScalarGridSpec(
            num_scalar_prefetch=0,
            grid=(B, K, nc),
            in_specs=[
                pl.BlockSpec((1, 1, Lc, d), lambda b, k, c: (b, k, c, 0)),
                pl.BlockSpec((1, 1, Lc, d), lambda b, k, c: (b, k, c, 0)),
                pl.BlockSpec((1, 1, Lc // 8, 2 * N, 8),
                             lambda b, k, c: (b, k, c, 0, 0)),
                pl.BlockSpec((1, N, d), lambda b, k, c: (k, 0, 0)),
                pl.BlockSpec((1, 1, d), lambda b, k, c: (k, 0, 0)),
                pl.BlockSpec((1, 1, d), lambda b, k, c: (k, 0, 0)),
            ],
            out_specs=pl.BlockSpec((1, 1, Lc, d), lambda b, k, c: (b, k, c, 0)),
            scratch_shapes=[
                pltpu.VMEM((N, d), jnp.float32),     # carried recurrent state h
                pltpu.VMEM((Lc, d), jnp.float32),    # softplus(dt + bias)
                pltpu.VMEM((Lc, d), jnp.float32),    # dt * u
            ],
        ),
        compiler_params=pltpu.CompilerParams(
            dimension_semantics=("parallel", "parallel", "arbitrary"),
            vmem_limit_bytes=48 * 1024 * 1024),
    )(u.astype(jnp.float32), dt.astype(jnp.float32), bc5.astype(jnp.float32),
      A_t.astype(jnp.float32), Dp.astype(jnp.float32), bias.astype(jnp.float32))
    return y[:, :, :L, :]


# ----------------------------------------------------------------------------
# Pallas kernel 2: fused LayerNorm + SiLU(z) gating + out_proj matmul, tiled over rows
# ----------------------------------------------------------------------------
def _out_gate_proj_kernel(y_ref, z_ref, g_ref, b_ref, w_ref, o_ref):
    y = y_ref[...]                                     # (TM, d) f32
    mu = jnp.mean(y, axis=-1, keepdims=True)
    var = jnp.mean(jnp.square(y - mu), axis=-1, keepdims=True)
    yn = (y - mu) * lax.rsqrt(var + 1e-5) * g_ref[...] + b_ref[...]
    z = z_ref[...]
    gated = yn * (z * jax.nn.sigmoid(z))               # SiLU gate (f32)
    # matmul operands in the weight dtype (bf16 by default), f32 accumulation
    o_ref[...] = jnp.dot(gated.astype(w_ref.dtype), w_ref[...],
                         preferred_element_type=jnp.float32)


def out_gate_proj_pallas(y, z, gamma, beta, out_w, *, matmul_dtype=jnp.bfloat16,
                         row_tile=512):
    B, H, W, d = y.shape
    M = B * H * W
    Co = out_w.shape[0]

    y2 = y.reshape(M, d).astype(jnp.float32)
    z2 = z.reshape(M, d).astype(jnp.float32)

    TM = row_tile if M >= row_tile else _round_up(M, 8)
    Mp = _round_up(M, TM)
    if Mp != M:
        y2 = jnp.pad(y2, ((0, Mp - M), (0, 0)))
        z2 = jnp.pad(z2, ((0, Mp - M), (0, 0)))

    Cop = _round_up(Co, 128)                           # lane-dense output stores
    w = jnp.transpose(out_w).astype(matmul_dtype)      # (d, Co)
    if Cop != Co:
        w = jnp.pad(w, ((0, 0), (0, Cop - Co)))

    out = pl.pallas_call(
        _out_gate_proj_kernel,
        out_shape=jax.ShapeDtypeStruct((Mp, Cop), jnp.float32),
        grid_spec=pltpu.PrefetchScalarGridSpec(
            num_scalar_prefetch=0,
            grid=(Mp // TM,),
            in_specs=[
                pl.BlockSpec((TM, d), lambda i: (i, 0)),
                pl.BlockSpec((TM, d), lambda i: (i, 0)),
                pl.BlockSpec((1, d), lambda i: (0, 0)),
                pl.BlockSpec((1, d), lambda i: (0, 0)),
                pl.BlockSpec((d, Cop), lambda i: (0, 0)),
            ],
            out_specs=pl.BlockSpec((TM, Cop), lambda i: (i, 0)),
        ),
        compiler_params=pltpu.CompilerParams(
            dimension_semantics=("parallel",),
            vmem_limit_bytes=48 * 1024 * 1024),
    )(y2, z2, gamma.reshape(1, d).astype(jnp.float32),
      beta.reshape(1, d).astype(jnp.float32), w)
    return out[:M, :Co].reshape(B, H, W, Co)


# ----------------------------------------------------------------------------
# Pure-JAX reference for the selective scan (used only to validate the kernel)
# ----------------------------------------------------------------------------
def selective_scan_ref(u, dt, A_t, bc, Dp, bias):
    # u, dt : (B, K, L, d); A_t : (K, N, d); bc : (B, K, 2N, L); Dp, bias : (K, 1, d)
    Bb, K, L, d = u.shape
    N = A_t.shape[1]
    dtsp = _softplus(dt + bias[None])                      # (B, K, L, d)
    Bm = jnp.transpose(bc[:, :, :N, :], (3, 0, 1, 2))      # (L, B, K, N)
    Cm = jnp.transpose(bc[:, :, N:, :], (3, 0, 1, 2))      # (L, B, K, N)
    u_t = jnp.transpose(u, (2, 0, 1, 3))                   # (L, B, K, d)
    dt_t = jnp.transpose(dtsp, (2, 0, 1, 3))

    def step(h, inp):
        u_l, dt_l, B_l, C_l = inp
        dA = jnp.exp(dt_l[:, :, None, :] * A_t[None])                    # (B, K, N, d)
        h = dA * h + B_l[..., None] * (dt_l * u_l)[:, :, None, :]
        y = jnp.sum(C_l[..., None] * h, axis=2) + Dp[None, :, 0, :] * u_l
        return h, y

    h0 = jnp.zeros((Bb, K, N, d), jnp.float32)
    _, ys = lax.scan(step, h0, (u_t, dt_t, Bm, Cm))
    return jnp.transpose(ys, (1, 2, 0, 3))                 # (B, K, L, d)


# ----------------------------------------------------------------------------
# Full SS2D forward (glue in JAX, hot paths in Pallas)
# ----------------------------------------------------------------------------
def ss2d_forward(x, p, use_pallas=True, matmul_dtype=jnp.bfloat16):
    B, H, W, C = x.shape
    d_inner = p["conv_b"].shape[0]
    d_state = p["A_logs"].shape[-1]
    K = 4
    L = H * W
    R = p["dt_projs_weight"].shape[-1]

    # in_proj (no bias)
    xz = jnp.einsum("bhwc,ec->bhwe", x, p["in_proj_w"])
    xh, z = jnp.split(xz, 2, axis=-1)

    # depthwise conv (torch NCHW Conv2d, groups=d_inner) done in NHWC, then SiLU
    w_hwio = jnp.transpose(p["conv_w"], (2, 3, 1, 0))       # (kh, kw, 1, d_inner)
    pad = (p["conv_w"].shape[-1] - 1) // 2
    xc = lax.conv_general_dilated(
        xh, w_hwio, (1, 1), ((pad, pad), (pad, pad)),
        dimension_numbers=("NHWC", "HWIO", "NHWC"),
        feature_group_count=d_inner) + p["conv_b"]
    xc = xc * jax.nn.sigmoid(xc)

    # 4 scan directions built directly in (B, K, L, d) layout (transposes folded in)
    x_hw = xc.reshape(B, L, d_inner)                                # row-major  (H, W)
    x_wh = jnp.transpose(xc, (0, 2, 1, 3)).reshape(B, L, d_inner)   # col-major  (W, H)
    xs = jnp.stack([x_hw, x_wh,
                    jnp.flip(x_hw, axis=1), jnp.flip(x_wh, axis=1)],
                   axis=1).astype(jnp.float32)                      # (B, 4, L, d)

    xw = p["x_proj_weight"]                                         # (K, R+2N, d)
    dts_r = jnp.einsum("bkld,krd->bklr", xs, xw[:, :R])             # (B, K, L, R)
    bc = jnp.einsum("bkld,kcd->bkcl", xs, xw[:, R:])                # (B, K, 2N, L)
    dts = jnp.einsum("bklr,kdr->bkld", dts_r, p["dt_projs_weight"]) # (B, K, L, d)

    A_t = jnp.transpose(
        (-jnp.exp(p["A_logs"].astype(jnp.float32))).reshape(K, d_inner, d_state),
        (0, 2, 1))                                                  # (K, N, d)
    Dp = p["Ds"].astype(jnp.float32).reshape(K, 1, d_inner)
    bias = p["dt_projs_bias"].astype(jnp.float32).reshape(K, 1, d_inner)

    if use_pallas:
        out_y = selective_scan_pallas(xs, dts.astype(jnp.float32), A_t,
                                      bc.astype(jnp.float32), Dp, bias)
    else:
        out_y = selective_scan_ref(xs, dts.astype(jnp.float32), A_t,
                                   bc.astype(jnp.float32), Dp, bias)
    # out_y : (B, K, L, d)

    # merge the 4 directions back to (B, H, W, d)
    y0 = out_y[:, 0].reshape(B, H, W, d_inner)
    y1 = jnp.transpose(out_y[:, 1].reshape(B, W, H, d_inner), (0, 2, 1, 3))
    y2 = jnp.flip(out_y[:, 2], axis=1).reshape(B, H, W, d_inner)
    y3 = jnp.transpose(jnp.flip(out_y[:, 3], axis=1).reshape(B, W, H, d_inner),
                       (0, 2, 1, 3))
    y = y0 + y1 + y2 + y3

    if use_pallas:
        out = out_gate_proj_pallas(y, z, p["ln_gamma"], p["ln_beta"],
                                   p["out_proj_w"], matmul_dtype=matmul_dtype)
    else:
        mu = jnp.mean(y, axis=-1, keepdims=True)
        var = jnp.mean(jnp.square(y - mu), axis=-1, keepdims=True)
        yn = (y - mu) * lax.rsqrt(var + 1e-5) * p["ln_gamma"] + p["ln_beta"]
        gated = yn * (z * jax.nn.sigmoid(z))
        out = jnp.einsum("bhwd,do->bhwo", gated.astype(matmul_dtype),
                         jnp.transpose(p["out_proj_w"]).astype(matmul_dtype),
                         preferred_element_type=jnp.float32)
    return out


# ----------------------------------------------------------------------------
# Deterministic parameter init (same shapes as the PyTorch module __init__)
# ----------------------------------------------------------------------------
def init_params(key, d_model=4, d_state=16, d_conv=3, expand=2,
                dt_min=0.001, dt_max=0.1, dt_init_floor=1e-4):
    d_inner = int(expand * d_model)
    dt_rank = math.ceil(d_model / 16)
    ks = jax.random.split(key, 8)
    p = {}
    p["in_proj_w"] = jax.random.normal(ks[0], (2 * d_inner, d_model), jnp.float32) * 0.2
    p["conv_w"] = jax.random.normal(ks[1], (d_inner, 1, d_conv, d_conv), jnp.float32) * 0.2
    p["conv_b"] = jax.random.normal(ks[2], (d_inner,), jnp.float32) * 0.1
    p["x_proj_weight"] = jax.random.normal(
        ks[3], (4, dt_rank + 2 * d_state, d_inner), jnp.float32) * 0.2
    dt_std = dt_rank ** -0.5
    p["dt_projs_weight"] = jax.random.uniform(
        ks[4], (4, d_inner, dt_rank), jnp.float32, -dt_std, dt_std)
    dt = jnp.exp(jax.random.uniform(ks[5], (4, d_inner), jnp.float32)
                 * (math.log(dt_max) - math.log(dt_min)) + math.log(dt_min))
    dt = jnp.maximum(dt, dt_init_floor)
    p["dt_projs_bias"] = dt + jnp.log(-jnp.expm1(-dt))          # inv softplus
    A = jnp.tile(jnp.arange(1, d_state + 1, dtype=jnp.float32)[None, :], (4 * d_inner, 1))
    p["A_logs"] = jnp.log(A)
    p["Ds"] = jnp.ones((4 * d_inner,), jnp.float32)
    p["ln_gamma"] = jnp.ones((d_inner,), jnp.float32)
    p["ln_beta"] = jnp.zeros((d_inner,), jnp.float32)
    p["out_proj_w"] = jax.random.normal(ks[6], (d_model, d_inner), jnp.float32) * 0.2
    return p


if __name__ == "__main__":
    key = jax.random.PRNGKey(0)
    kp, kx, kk = jax.random.split(key, 3)

    # ---- direct check of the selective-scan kernel with multi-chunk state carry ----
    Bt, Kt, Lt, dch, Nt = 2, 4, 256, 8, 16
    ks = jax.random.split(kk, 6)
    u_t = jax.random.normal(ks[0], (Bt, Kt, Lt, dch), jnp.float32)
    dt_t = 0.1 * jax.random.normal(ks[1], (Bt, Kt, Lt, dch), jnp.float32)
    bc_t = 0.5 * jax.random.normal(ks[2], (Bt, Kt, 2 * Nt, Lt), jnp.float32)
    A_tt = -jnp.exp(0.3 * jax.random.normal(ks[3], (Kt, Nt, dch), jnp.float32))
    Dp_t = jax.random.normal(ks[4], (Kt, 1, dch), jnp.float32)
    bias_t = 0.1 * jax.random.normal(ks[5], (Kt, 1, dch), jnp.float32)

    scan_fn = jax.jit(functools.partial(selective_scan_pallas, max_chunk=128))
    y_pal = jax.block_until_ready(scan_fn(u_t, dt_t, A_tt, bc_t, Dp_t, bias_t))
    y_ref = jax.block_until_ready(
        jax.jit(selective_scan_ref)(u_t, dt_t, A_tt, bc_t, Dp_t, bias_t))
    scan_err = float(jnp.max(jnp.abs(y_pal - y_ref)))
    if not bool(jnp.allclose(y_pal, y_ref, atol=1e-4, rtol=1e-4)):
        raise AssertionError(f"selective-scan kernel mismatch, max abs err = {scan_err}")

    # ---- full SS2D forward ----
    d_model = 4
    B, H, W = 2, 16, 16
    params = init_params(kp, d_model=d_model)
    x = jax.random.normal(kx, (B, H, W, d_model), jnp.float32)

    # strict check of the whole Pallas path with an f32 out_proj matmul
    out_f32 = jax.block_until_ready(
        jax.jit(functools.partial(ss2d_forward, use_pallas=True,
                                  matmul_dtype=jnp.float32))(x, params))
    ref_f32 = jax.block_until_ready(
        jax.jit(functools.partial(ss2d_forward, use_pallas=False,
                                  matmul_dtype=jnp.float32))(x, params))
    assert out_f32.shape == (B, H, W, d_model)
    err_f32 = float(jnp.max(jnp.abs(out_f32 - ref_f32)))
    if not bool(jnp.allclose(out_f32, ref_f32, atol=1e-4, rtol=1e-4)):
        raise AssertionError(f"SS2D forward (f32 matmul) mismatch, max abs err = {err_f32}")

    # default perf path (bf16 out_proj matmul, f32 accumulation) vs matching reference
    out_bf16 = jax.block_until_ready(
        jax.jit(functools.partial(ss2d_forward, use_pallas=True))(x, params))
    ref_bf16 = jax.block_until_ready(
        jax.jit(functools.partial(ss2d_forward, use_pallas=False))(x, params))
    err_bf16 = float(jnp.max(jnp.abs(out_bf16 - ref_bf16)))
    if not bool(jnp.allclose(out_bf16, ref_bf16, atol=1e-2, rtol=1e-2)):
        raise AssertionError(f"SS2D forward (bf16 matmul) mismatch, max abs err = {err_bf16}")

    print("KERNEL_OK")
</pallas_src>

<mosaic_0001>
module attributes {stable_mosaic.version = 11 : i64} {
  func.func @_selective_scan_kernel(%arg0: i32, %arg1: i32, %arg2: i32, %arg3: memref<1x1x128x8xf32, #tpu.memory_space<vmem>>, %arg4: memref<1x1x128x8xf32, #tpu.memory_space<vmem>>, %arg5: memref<1x1x16x32x8xf32, #tpu.memory_space<vmem>>, %arg6: memref<1x16x8xf32, #tpu.memory_space<vmem>>, %arg7: memref<1x1x8xf32, #tpu.memory_space<vmem>>, %arg8: memref<1x1x8xf32, #tpu.memory_space<vmem>>, %arg9: memref<1x1x128x8xf32, #tpu.memory_space<vmem>>, %arg10: memref<16x8xf32, #tpu.memory_space<vmem>>, %arg11: memref<128x8xf32, #tpu.memory_space<vmem>>, %arg12: memref<128x8xf32, #tpu.memory_space<vmem>>) attributes {dimension_semantics = [#tpu.dimension_semantics<parallel>, #tpu.dimension_semantics<parallel>, #tpu.dimension_semantics<arbitrary>], iteration_bounds = array<i64: 2, 4, 2>, scalar_prefetch = 0 : i64, scratch_operands = 3 : i64, tpu.core_type = #tpu.core_type<tc>, window_params = [{transform_indices = @transform_0, window_bounds = array<i64: 1, 1, 128, 8>}, {transform_indices = @transform_1, window_bounds = array<i64: 1, 1, 128, 8>}, {transform_indices = @transform_2, window_bounds = array<i64: 1, 1, 16, 32, 8>}, {transform_indices = @transform_3, window_bounds = array<i64: 1, 16, 8>}, {transform_indices = @transform_4, window_bounds = array<i64: 1, 1, 8>}, {transform_indices = @transform_5, window_bounds = array<i64: 1, 1, 8>}, {transform_indices = @transform_6, window_bounds = array<i64: 1, 1, 128, 8>}]} {
    %c0_i32 = arith.constant 0 : i32
    %0 = arith.cmpi eq, %arg2, %c0_i32 : i32
    %1 = arith.extui %0 : i1 to i32
    %c0_i32_0 = arith.constant 0 : i32
    %2 = arith.cmpi ne, %1, %c0_i32_0 : i32
    scf.if %2 {
      %cst_29 = arith.constant 0.000000e+00 : f32
      %32 = vector.broadcast %cst_29 : f32 to vector<16x8xf32>
      %c0_30 = arith.constant 0 : index
      %c0_31 = arith.constant 0 : index
      %33 = vector.load %arg10[%c0_30, %c0_31] : memref<16x8xf32, #tpu.memory_space<vmem>>, vector<16x8xf32>
      tpu.vector_store %arg10[%c0_30, %c0_31], %32 {strides = array<i32>} : memref<16x8xf32, #tpu.memory_space<vmem>>, vector<16x8xf32>,
    } else {
    }
    %c0 = arith.constant 0 : index
    %c0_1 = arith.constant 0 : index
    %c0_2 = arith.constant 0 : index
    %3 = vector.load %arg6[%c0, %c0_1, %c0_2] : memref<1x16x8xf32, #tpu.memory_space<vmem>>, vector<1x16x8xf32>
    %4 = vector.shape_cast %3 : vector<1x16x8xf32> to vector<16x8xf32>
    %c0_3 = arith.constant 0 : index
    %c0_4 = arith.constant 0 : index
    %c0_5 = arith.constant 0 : index
    %5 = vector.load %arg7[%c0_3, %c0_4, %c0_5] : memref<1x1x8xf32, #tpu.memory_space<vmem>>, vector<1x1x8xf32>
    %6 = vector.shape_cast %5 : vector<1x1x8xf32> to vector<1x8xf32>
    %c0_6 = arith.constant 0 : index
    %c0_7 = arith.constant 0 : index
    %c0_8 = arith.constant 0 : index
    %7 = vector.load %arg8[%c0_6, %c0_7, %c0_8] : memref<1x1x8xf32, #tpu.memory_space<vmem>>, vector<1x1x8xf32>
    %8 = vector.shape_cast %7 : vector<1x1x8xf32> to vector<1x8xf32>
    %c0_9 = arith.constant 0 : index
    %c0_10 = arith.constant 0 : index
    %c0_11 = arith.constant 0 : index
    %c0_12 = arith.constant 0 : index
    %9 = vector.load %arg3[%c0_9, %c0_10, %c0_11, %c0_12] : memref<1x1x128x8xf32, #tpu.memory_space<vmem>>, vector<1x1x128x8xf32>
    %10 = vector.shape_cast %9 : vector<1x1x128x8xf32> to vector<128x8xf32>
    %c0_13 = arith.constant 0 : index
    %c0_14 = arith.constant 0 : index
    %c0_15 = arith.constant 0 : index
    %c0_16 = arith.constant 0 : index
    %11 = vector.load %arg4[%c0_13, %c0_14, %c0_15, %c0_16] : memref<1x1x128x8xf32, #tpu.memory_space<vmem>>, vector<1x1x128x8xf32>
    %12 = vector.shape_cast %11 : vector<1x1x128x8xf32> to vector<128x8xf32>
    %13 = vector.broadcast %8 : vector<1x8xf32> to vector<128x8xf32>
    %14 = arith.addf %12, %13 : vector<128x8xf32>
    %cst = arith.constant 2.000000e+01 : f32
    %15 = vector.broadcast %cst : f32 to vector<128x8xf32>
    %16 = arith.cmpf ogt, %14, %15 : vector<128x8xf32>
    %cst_17 = arith.constant 2.000000e+01 : f32
    %17 = vector.broadcast %cst_17 : f32 to vector<128x8xf32>
    %18 = arith.minimumf %14, %17 : vector<128x8xf32>
    %19 = math.exp %18 : vector<128x8xf32>
    %cst_18 = arith.constant 1.000000e+00 : f32
    %20 = vector.broadcast %cst_18 : f32 to vector<128x8xf32>
    %21 = arith.addf %20, %19 : vector<128x8xf32>
    %22 = math.log %21 : vector<128x8xf32>
    %23 = arith.select %16, %14, %22 : vector<128x8xi1>, vector<128x8xf32>
    %c0_19 = arith.constant 0 : index
    %c0_20 = arith.constant 0 : index
    %24 = vector.load %arg11[%c0_19, %c0_20] : memref<128x8xf32, #tpu.memory_space<vmem>>, vector<128x8xf32>
    tpu.vector_store %arg11[%c0_19, %c0_20], %23 {strides = array<i32>} : memref<128x8xf32, #tpu.memory_space<vmem>>, vector<128x8xf32>,
    %25 = arith.mulf %23, %10 : vector<128x8xf32>
    %c0_21 = arith.constant 0 : index
    %c0_22 = arith.constant 0 : index
    %26 = vector.load %arg12[%c0_21, %c0_22] : memref<128x8xf32, #tpu.memory_space<vmem>>, vector<128x8xf32>
    tpu.vector_store %arg12[%c0_21, %c0_22], %25 {strides = array<i32>} : memref<128x8xf32, #tpu.memory_space<vmem>>, vector<128x8xf32>,
    %27 = tpu.iota {dimensions = array<i32: 0>} : vector<8x1xi32>
    %c0_23 = arith.constant 0 : index
    %c0_24 = arith.constant 0 : index
    %28 = vector.load %arg10[%c0_23, %c0_24] : memref<16x8xf32, #tpu.memory_space<vmem>>, vector<16x8xf32>
    %c0_i32_25 = arith.constant 0 : i32
    %c16_i32 = arith.constant 16 : i32
    %29 = arith.addi %c0_i32_25, %c16_i32 : i32
    %c1_i32 = arith.constant 1 : i32
    %30 = scf.for %arg13 = %c0_i32_25 to %29 step %c1_i32 iter_args(%arg14 = %28) -> (vector<16x8xf32>)  : i32 {
      %c8_i32 = arith.constant 8 : i32
      %32 = arith.muli %arg13, %c8_i32 : i32
      %33 = tpu.assume_multiple %32, 8 : i32
      %34 = arith.index_cast %33 : i32 to index
      %c0_29 = arith.constant 0 : index
      %35 = vector.load %arg11[%34, %c0_29] : memref<128x8xf32, #tpu.memory_space<vmem>>, vector<8x8xf32>
      %36 = arith.index_cast %33 : i32 to index
      %c0_30 = arith.constant 0 : index
      %37 = vector.load %arg12[%36, %c0_30] : memref<128x8xf32, #tpu.memory_space<vmem>>, vector<8x8xf32>
      %c0_31 = arith.constant 0 : index
      %c0_32 = arith.constant 0 : index
      %38 = arith.index_cast %33 : i32 to index
      %c0_33 = arith.constant 0 : index
      %39 = vector.load %arg3[%c0_31, %c0_32, %38, %c0_33] : memref<1x1x128x8xf32, #tpu.memory_space<vmem>>, vector<1x1x8x8xf32>
      %40 = vector.shape_cast %39 : vector<1x1x8x8xf32> to vector<8x8xf32>
      %c0_34 = arith.constant 0 : index
      %c0_35 = arith.constant 0 : index
      %41 = arith.index_cast %arg13 : i32 to index
      %c0_36 = arith.constant 0 : index
      %c0_37 = arith.constant 0 : index
      %42 = vector.load %arg5[%c0_34, %c0_35, %41, %c0_36, %c0_37] : memref<1x1x16x32x8xf32, #tpu.memory_space<vmem>>, vector<1x1x1x32x8xf32>
      %43 = vector.shape_cast %42 : vector<1x1x1x32x8xf32> to vector<32x8xf32>
      %cst_38 = arith.constant 0.000000e+00 : f32
      %44 = vector.broadcast %cst_38 : f32 to vector<8x8xf32>
      %45 = vector.extract_strided_slice %35 {offsets = [0, 0], sizes = [1, 8], strides = [1, 1]} : vector<8x8xf32> to vector<1x8xf32>
      %46 = vector.broadcast %45 : vector<1x8xf32> to vector<16x8xf32>
      %47 = arith.mulf %46, %4 : vector<16x8xf32>
      %48 = math.exp %47 : vector<16x8xf32>
      %49 = arith.mulf %48, %arg14 : vector<16x8xf32>
      %50 = vector.extract_strided_slice %43 {offsets = [0, 0], sizes = [16, 1], strides = [1, 1]} : vector<32x8xf32> to vector<16x1xf32>
      %51 = vector.extract_strided_slice %37 {offsets = [0, 0], sizes = [1, 8], strides = [1, 1]} : vector<8x8xf32> to vector<1x8xf32>
      %52 = vector.broadcast %50 : vector<16x1xf32> to vector<16x8xf32>
      %53 = vector.broadcast %51 : vector<1x8xf32> to vector<16x8xf32>
      %54 = arith.mulf %52, %53 : vector<16x8xf32>
      %55 = arith.addf %49, %54 : vector<16x8xf32>
      %56 = vector.extract_strided_slice %43 {offsets = [16, 0], sizes = [16, 1], strides = [1, 1]} : vector<32x8xf32> to vector<16x1xf32>
      %57 = vector.broadcast %56 : vector<16x1xf32> to vector<16x8xf32>
      %58 = arith.mulf %57, %55 : vector<16x8xf32>
      %cst_39 = arith.constant dense<0.000000e+00> : vector<8xf32>
      %59 = vector.multi_reduction <add>, %58, %cst_39 [0] : vector<16x8xf32> to vector<8xf32>
      %60 = vector.shape_cast %59 : vector<8xf32> to vector<1x8xf32>
      %c0_i32_40 = arith.constant 0 : i32
      %61 = vector.broadcast %c0_i32_40 : i32 to vector<8x1xi32>
      %62 = arith.cmpi eq, %27, %61 : vector<8x1xi32>
      %cst_41 = arith.constant 0.000000e+00 : f32
      %63 = vector.shape_cast %62 : vector<8x1xi1> to vector<8x1xi1>
      %64 = vector.broadcast %63 : vector<8x1xi1> to vector<8x8xi1>
      %65 = vector.shape_cast %60 : vector<1x8xf32> to vector<1x8xf32>
      %66 = vector.broadcast %65 : vector<1x8xf32> to vector<8x8xf32>
      %67 = vector.broadcast %cst_41 : f32 to vector<8x8xf32>
      %68 = arith.select %64, %66, %67 : vector<8x8xi1>, vector<8x8xf32>
      %69 = arith.addf %44, %68 : vector<8x8xf32>
      %70 = vector.extract_strided_slice %35 {offsets = [1, 0], sizes = [1, 8], strides = [1, 1]} : vector<8x8xf32> to vector<1x8xf32>
      %71 = vector.broadcast %70 : vector<1x8xf32> to vector<16x8xf32>
      %72 = arith.mulf %71, %4 : vector<16x8xf32>
      %73 = math.exp %72 : vector<16x8xf32>
      %74 = arith.mulf %73, %55 : vector<16x8xf32>
      %75 = vector.extract_strided_slice %43 {offsets = [0, 1], sizes = [16, 1], strides = [1, 1]} : vector<32x8xf32> to vector<16x1xf32>
      %76 = vector.extract_strided_slice %37 {offsets = [1, 0], sizes = [1, 8], strides = [1, 1]} : vector<8x8xf32> to vector<1x8xf32>
      %77 = vector.broadcast %75 : vector<16x1xf32> to vector<16x8xf32>
      %78 = vector.broadcast %76 : vector<1x8xf32> to vector<16x8xf32>
      %79 = arith.mulf %77, %78 : vector<16x8xf32>
      %80 = arith.addf %74, %79 : vector<16x8xf32>
      %81 = vector.extract_strided_slice %43 {offsets = [16, 1], sizes = [16, 1], strides = [1, 1]} : vector<32x8xf32> to vector<16x1xf32>
      %82 = vector.broadcast %81 : vector<16x1xf32> to vector<16x8xf32>
      %83 = arith.mulf %82, %80 : vector<16x8xf32>
      %cst_42 = arith.constant dense<0.000000e+00> : vector<8xf32>
      %84 = vector.multi_reduction <add>, %83, %cst_42 [0] : vector<16x8xf32> to vector<8xf32>
      %85 = vector.shape_cast %84 : vector<8xf32> to vector<1x8xf32>
      %c1_i32_43 = arith.constant 1 : i32
      %86 = vector.broadcast %c1_i32_43 : i32 to vector<8x1xi32>
      %87 = arith.cmpi eq, %27, %86 : vector<8x1xi32>
      %cst_44 = arith.constant 0.000000e+00 : f32
      %88 = vector.shape_cast %87 : vector<8x1xi1> to vector<8x1xi1>
      %89 = vector.broadcast %88 : vector<8x1xi1> to vector<8x8xi1>
      %90 = vector.shape_cast %85 : vector<1x8xf32> to vector<1x8xf32>
      %91 = vector.broadcast %90 : vector<1x8xf32> to vector<8x8xf32>
      %92 = vector.broadcast %cst_44 : f32 to vector<8x8xf32>
      %93 = arith.select %89, %91, %92 : vector<8x8xi1>, vector<8x8xf32>
      %94 = arith.addf %69, %93 : vector<8x8xf32>
      %95 = vector.extract_strided_slice %35 {offsets = [2, 0], sizes = [1, 8], strides = [1, 1]} : vector<8x8xf32> to vector<1x8xf32>
      %96 = vector.broadcast %95 : vector<1x8xf32> to vector<16x8xf32>
      %97 = arith.mulf %96, %4 : vector<16x8xf32>
      %98 = math.exp %97 : vector<16x8xf32>
      %99 = arith.mulf %98, %80 : vector<16x8xf32>
      %100 = vector.extract_strided_slice %43 {offsets = [0, 2], sizes = [16, 1], strides = [1, 1]} : vector<32x8xf32> to vector<16x1xf32>
      %101 = vector.extract_strided_slice %37 {offsets = [2, 0], sizes = [1, 8], strides = [1, 1]} : vector<8x8xf32> to vector<1x8xf32>
      %102 = vector.broadcast %100 : vector<16x1xf32> to vector<16x8xf32>
      %103 = vector.broadcast %101 : vector<1x8xf32> to vector<16x8xf32>
      %104 = arith.mulf %102, %103 : vector<16x8xf32>
      %105 = arith.addf %99, %104 : vector<16x8xf32>
      %106 = vector.extract_strided_slice %43 {offsets = [16, 2], sizes = [16, 1], strides = [1, 1]} : vector<32x8xf32> to vector<16x1xf32>
      %107 = vector.broadcast %106 : vector<16x1xf32> to vector<16x8xf32>
      %108 = arith.mulf %107, %105 : vector<16x8xf32>
      %cst_45 = arith.constant dense<0.000000e+00> : vector<8xf32>
      %109 = vector.multi_reduction <add>, %108, %cst_45 [0] : vector<16x8xf32> to vector<8xf32>
      %110 = vector.shape_cast %109 : vector<8xf32> to vector<1x8xf32>
      %c2_i32 = arith.constant 2 : i32
      %111 = vector.broadcast %c2_i32 : i32 to vector<8x1xi32>
      %112 = arith.cmpi eq, %27, %111 : vector<8x1xi32>
      %cst_46 = arith.constant 0.000000e+00 : f32
      %113 = vector.shape_cast %112 : vector<8x1xi1> to vector<8x1xi1>
      %114 = vector.broadcast %113 : vector<8x1xi1> to vector<8x8xi1>
      %115 = vector.shape_cast %110 : vector<1x8xf32> to vector<1x8xf32>
      %116 = vector.broadcast %115 : vector<1x8xf32> to vector<8x8xf32>
      %117 = vector.broadcast %cst_46 : f32 to vector<8x8xf32>
      %118 = arith.select %114, %116, %117 : vector<8x8xi1>, vector<8x8xf32>
      %119 = arith.addf %94, %118 : vector<8x8xf32>
      %120 = vector.extract_strided_slice %35 {offsets = [3, 0], sizes = [1, 8], strides = [1, 1]} : vector<8x8xf32> to vector<1x8xf32>
      %121 = vector.broadcast %120 : vector<1x8xf32> to vector<16x8xf32>
      %122 = arith.mulf %121, %4 : vector<16x8xf32>
      %123 = math.exp %122 : vector<16x8xf32>
      %124 = arith.mulf %123, %105 : vector<16x8xf32>
      %125 = vector.extract_strided_slice %43 {offsets = [0, 3], sizes = [16, 1], strides = [1, 1]} : vector<32x8xf32> to vector<16x1xf32>
      %126 = vector.extract_strided_slice %37 {offsets = [3, 0], sizes = [1, 8], strides = [1, 1]} : vector<8x8xf32> to vector<1x8xf32>
      %127 = vector.broadcast %125 : vector<16x1xf32> to vector<16x8xf32>
      %128 = vector.broadcast %126 : vector<1x8xf32> to vector<16x8xf32>
      %129 = arith.mulf %127, %128 : vector<16x8xf32>
      %130 = arith.addf %124, %129 : vector<16x8xf32>
      %131 = vector.extract_strided_slice %43 {offsets = [16, 3], sizes = [16, 1], strides = [1, 1]} : vector<32x8xf32> to vector<16x1xf32>
      %132 = vector.broadcast %131 : vector<16x1xf32> to vector<16x8xf32>
      %133 = arith.mulf %132, %130 : vector<16x8xf32>
      %cst_47 = arith.constant dense<0.000000e+00> : vector<8xf32>
      %134 = vector.multi_reduction <add>, %133, %cst_47 [0] : vector<16x8xf32> to vector<8xf32>
      %135 = vector.shape_cast %134 : vector<8xf32> to vector<1x8xf32>
      %c3_i32 = arith.constant 3 : i32
      %136 = vector.broadcast %c3_i32 : i32 to vector<8x1xi32>
      %137 = arith.cmpi eq, %27, %136 : vector<8x1xi32>
      %cst_48 = arith.constant 0.000000e+00 : f32
      %138 = vector.shape_cast %137 : vector<8x1xi1> to vector<8x1xi1>
      %139 = vector.broadcast %138 : vector<8x1xi1> to vector<8x8xi1>
      %140 = vector.shape_cast %135 : vector<1x8xf32> to vector<1x8xf32>
      %141 = vector.broadcast %140 : vector<1x8xf32> to vector<8x8xf32>
      %142 = vector.broadcast %cst_48 : f32 to vector<8x8xf32>
      %143 = arith.select %139, %141, %142 : vector<8x8xi1>, vector<8x8xf32>
      %144 = arith.addf %119, %143 : vector<8x8xf32>
      %145 = vector.extract_strided_slice %35 {offsets = [4, 0], sizes = [1, 8], strides = [1, 1]} : vector<8x8xf32> to vector<1x8xf32>
      %146 = vector.broadcast %145 : vector<1x8xf32> to vector<16x8xf32>
      %147 = arith.mulf %146, %4 : vector<16x8xf32>
      %148 = math.exp %147 : vector<16x8xf32>
      %149 = arith.mulf %148, %130 : vector<16x8xf32>
      %150 = vector.extract_strided_slice %43 {offsets = [0, 4], sizes = [16, 1], strides = [1, 1]} : vector<32x8xf32> to vector<16x1xf32>
      %151 = vector.extract_strided_slice %37 {offsets = [4, 0], sizes = [1, 8], strides = [1, 1]} : vector<8x8xf32> to vector<1x8xf32>
      %152 = vector.broadcast %150 : vector<16x1xf32> to vector<16x8xf32>
      %153 = vector.broadcast %151 : vector<1x8xf32> to vector<16x8xf32>
      %154 = arith.mulf %152, %153 : vector<16x8xf32>
      %155 = arith.addf %149, %154 : vector<16x8xf32>
      %156 = vector.extract_strided_slice %43 {offsets = [16, 4], sizes = [16, 1], strides = [1, 1]} : vector<32x8xf32> to vector<16x1xf32>
      %157 = vector.broadcast %156 : vector<16x1xf32> to vector<16x8xf32>
      %158 = arith.mulf %157, %155 : vector<16x8xf32>
      %cst_49 = arith.constant dense<0.000000e+00> : vector<8xf32>
      %159 = vector.multi_reduction <add>, %158, %cst_49 [0] : vector<16x8xf32> to vector<8xf32>
      %160 = vector.shape_cast %159 : vector<8xf32> to vector<1x8xf32>
      %c4_i32 = arith.constant 4 : i32
      %161 = vector.broadcast %c4_i32 : i32 to vector<8x1xi32>
      %162 = arith.cmpi eq, %27, %161 : vector<8x1xi32>
      %cst_50 = arith.constant 0.000000e+00 : f32
      %163 = vector.shape_cast %162 : vector<8x1xi1> to vector<8x1xi1>
      %164 = vector.broadcast %163 : vector<8x1xi1> to vector<8x8xi1>
      %165 = vector.shape_cast %160 : vector<1x8xf32> to vector<1x8xf32>
      %166 = vector.broadcast %165 : vector<1x8xf32> to vector<8x8xf32>
      %167 = vector.broadcast %cst_50 : f32 to vector<8x8xf32>
      %168 = arith.select %164, %166, %167 : vector<8x8xi1>, vector<8x8xf32>
      %169 = arith.addf %144, %168 : vector<8x8xf32>
      %170 = vector.extract_strided_slice %35 {offsets = [5, 0], sizes = [1, 8], strides = [1, 1]} : vector<8x8xf32> to vector<1x8xf32>
      %171 = vector.broadcast %170 : vector<1x8xf32> to vector<16x8xf32>
      %172 = arith.mulf %171, %4 : vector<16x8xf32>
      %173 = math.exp %172 : vector<16x8xf32>
      %174 = arith.mulf %173, %155 : vector<16x8xf32>
      %175 = vector.extract_strided_slice %43 {offsets = [0, 5], sizes = [16, 1], strides = [1, 1]} : vector<32x8xf32> to vector<16x1xf32>
      %176 = vector.extract_strided_slice %37 {offsets = [5, 0], sizes = [1, 8], strides = [1, 1]} : vector<8x8xf32> to vector<1x8xf32>
      %177 = vector.broadcast %175 : vector<16x1xf32> to vector<16x8xf32>
      %178 = vector.broadcast %176 : vector<1x8xf32> to vector<16x8xf32>
      %179 = arith.mulf %177, %178 : vector<16x8xf32>
      %180 = arith.addf %174, %179 : vector<16x8xf32>
      %181 = vector.extract_strided_slice %43 {offsets = [16, 5], sizes = [16, 1], strides = [1, 1]} : vector<32x8xf32> to vector<16x1xf32>
      %182 = vector.broadcast %181 : vector<16x1xf32> to vector<16x8xf32>
      %183 = arith.mulf %182, %180 : vector<16x8xf32>
      %cst_51 = arith.constant dense<0.000000e+00> : vector<8xf32>
      %184 = vector.multi_reduction <add>, %183, %cst_51 [0] : vector<16x8xf32> to vector<8xf32>
      %185 = vector.shape_cast %184 : vector<8xf32> to vector<1x8xf32>
      %c5_i32 = arith.constant 5 : i32
      %186 = vector.broadcast %c5_i32 : i32 to vector<8x1xi32>
      %187 = arith.cmpi eq, %27, %186 : vector<8x1xi32>
      %cst_52 = arith.constant 0.000000e+00 : f32
      %188 = vector.shape_cast %187 : vector<8x1xi1> to vector<8x1xi1>
      %189 = vector.broadcast %188 : vector<8x1xi1> to vector<8x8xi1>
      %190 = vector.shape_cast %185 : vector<1x8xf32> to vector<1x8xf32>
      %191 = vector.broadcast %190 : vector<1x8xf32> to vector<8x8xf32>
      %192 = vector.broadcast %cst_52 : f32 to vector<8x8xf32>
      %193 = arith.select %189, %191, %192 : vector<8x8xi1>, vector<8x8xf32>
      %194 = arith.addf %169, %193 : vector<8x8xf32>
      %195 = vector.extract_strided_slice %35 {offsets = [6, 0], sizes = [1, 8], strides = [1, 1]} : vector<8x8xf32> to vector<1x8xf32>
      %196 = vector.broadcast %195 : vector<1x8xf32> to vector<16x8xf32>
      %197 = arith.mulf %196, %4 : vector<16x8xf32>
      %198 = math.exp %197 : vector<16x8xf32>
      %199 = arith.mulf %198, %180 : vector<16x8xf32>
      %200 = vector.extract_strided_slice %43 {offsets = [0, 6], sizes = [16, 1], strides = [1, 1]} : vector<32x8xf32> to vector<16x1xf32>
      %201 = vector.extract_strided_slice %37 {offsets = [6, 0], sizes = [1, 8], strides = [1, 1]} : vector<8x8xf32> to vector<1x8xf32>
      %202 = vector.broadcast %200 : vector<16x1xf32> to vector<16x8xf32>
      %203 = vector.broadcast %201 : vector<1x8xf32> to vector<16x8xf32>
      %204 = arith.mulf %202, %203 : vector<16x8xf32>
      %205 = arith.addf %199, %204 : vector<16x8xf32>
      %206 = vector.extract_strided_slice %43 {offsets = [16, 6], sizes = [16, 1], strides = [1, 1]} : vector<32x8xf32> to vector<16x1xf32>
      %207 = vector.broadcast %206 : vector<16x1xf32> to vector<16x8xf32>
      %208 = arith.mulf %207, %205 : vector<16x8xf32>
      %cst_53 = arith.constant dense<0.000000e+00> : vector<8xf32>
      %209 = vector.multi_reduction <add>, %208, %cst_53 [0] : vector<16x8xf32> to vector<8xf32>
      %210 = vector.shape_cast %209 : vector<8xf32> to vector<1x8xf32>
      %c6_i32 = arith.constant 6 : i32
      %211 = vector.broadcast %c6_i32 : i32 to vector<8x1xi32>
      %212 = arith.cmpi eq, %27, %211 : vector<8x1xi32>
      %cst_54 = arith.constant 0.000000e+00 : f32
      %213 = vector.shape_cast %212 : vector<8x1xi1> to vector<8x1xi1>
      %214 = vector.broadcast %213 : vector<8x1xi1> to vector<8x8xi1>
      %215 = vector.shape_cast %210 : vector<1x8xf32> to vector<1x8xf32>
      %216 = vector.broadcast %215 : vector<1x8xf32> to vector<8x8xf32>
      %217 = vector.broadcast %cst_54 : f32 to vector<8x8xf32>
      %218 = arith.select %214, %216, %217 : vector<8x8xi1>, vector<8x8xf32>
      %219 = arith.addf %194, %218 : vector<8x8xf32>
      %220 = vector.extract_strided_slice %35 {offsets = [7, 0], sizes = [1, 8], strides = [1, 1]} : vector<8x8xf32> to vector<1x8xf32>
      %221 = vector.broadcast %220 : vector<1x8xf32> to vector<16x8xf32>
      %222 = arith.mulf %221, %4 : vector<16x8xf32>
      %223 = math.exp %222 : vector<16x8xf32>
      %224 = arith.mulf %223, %205 : vector<16x8xf32>
      %225 = vector.extract_strided_slice %43 {offsets = [0, 7], sizes = [16, 1], strides = [1, 1]} : vector<32x8xf32> to vector<16x1xf32>
      %226 = vector.extract_strided_slice %37 {offsets = [7, 0], sizes = [1, 8], strides = [1, 1]} : vector<8x8xf32> to vector<1x8xf32>
      %227 = vector.broadcast %225 : vector<16x1xf32> to vector<16x8xf32>
      %228 = vector.broadcast %226 : vector<1x8xf32> to vector<16x8xf32>
      %229 = arith.mulf %227, %228 : vector<16x8xf32>
      %230 = arith.addf %224, %229 : vector<16x8xf32>
      %231 = vector.extract_strided_slice %43 {offsets = [16, 7], sizes = [16, 1], strides = [1, 1]} : vector<32x8xf32> to vector<16x1xf32>
      %232 = vector.broadcast %231 : vector<16x1xf32> to vector<16x8xf32>
      %233 = arith.mulf %232, %230 : vector<16x8xf32>
      %cst_55 = arith.constant dense<0.000000e+00> : vector<8xf32>
      %234 = vector.multi_reduction <add>, %233, %cst_55 [0] : vector<16x8xf32> to vector<8xf32>
      %235 = vector.shape_cast %234 : vector<8xf32> to vector<1x8xf32>
      %c7_i32 = arith.constant 7 : i32
      %236 = vector.broadcast %c7_i32 : i32 to vector<8x1xi32>
      %237 = arith.cmpi eq, %27, %236 : vector<8x1xi32>
      %cst_56 = arith.constant 0.000000e+00 : f32
      %238 = vector.shape_cast %237 : vector<8x1xi1> to vector<8x1xi1>
      %239 = vector.broadcast %238 : vector<8x1xi1> to vector<8x8xi1>
      %240 = vector.shape_cast %235 : vector<1x8xf32> to vector<1x8xf32>
      %241 = vector.broadcast %240 : vector<1x8xf32> to vector<8x8xf32>
      %242 = vector.broadcast %cst_56 : f32 to vector<8x8xf32>
      %243 = arith.select %239, %241, %242 : vector<8x8xi1>, vector<8x8xf32>
      %244 = arith.addf %219, %243 : vector<8x8xf32>
      %245 = vector.broadcast %6 : vector<1x8xf32> to vector<8x8xf32>
      %246 = arith.mulf %245, %40 : vector<8x8xf32>
      %247 = arith.addf %244, %246 : vector<8x8xf32>
      %c0_57 = arith.constant 0 : index
      %c0_58 = arith.constant 0 : index
      %248 = arith.index_cast %33 : i32 to index
      %c0_59 = arith.constant 0 : index
      %249 = vector.load %arg9[%c0_57, %c0_58, %248, %c0_59] : memref<1x1x128x8xf32, #tpu.memory_space<vmem>>, vector<1x1x8x8xf32>
      %250 = vector.shape_cast %249 : vector<1x1x8x8xf32> to vector<8x8xf32>
      %251 = vector.shape_cast %247 : vector<8x8xf32> to vector<1x1x8x8xf32>
      tpu.vector_store %arg9[%c0_57, %c0_58, %248, %c0_59], %251 {strides = array<i32>} : memref<1x1x128x8xf32, #tpu.memory_space<vmem>>, vector<1x1x8x8xf32>,
      scf.yield %230 : vector<16x8xf32>
    }
    %c16_i32_26 = arith.constant 16 : i32
    %c0_27 = arith.constant 0 : index
    %c0_28 = arith.constant 0 : index
    %31 = vector.load %arg10[%c0_27, %c0_28] : memref<16x8xf32, #tpu.memory_space<vmem>>, vector<16x8xf32>
    tpu.vector_store %arg10[%c0_27, %c0_28], %30 {strides = array<i32>} : memref<16x8xf32, #tpu.memory_space<vmem>>, vector<16x8xf32>,
    return
  }
  func.func @transform_0(%arg0: i32, %arg1: i32, %arg2: i32) -> (i32, i32, i32, i32) {
    %c0_i32 = arith.constant 0 : i32
    %c0_i32_0 = arith.constant 0 : i32
    return %arg0, %arg1, %arg2, %c0_i32 : i32, i32, i32, i32
  }
  func.func @transform_1(%arg0: i32, %arg1: i32, %arg2: i32) -> (i32, i32, i32, i32) {
    %c0_i32 = arith.constant 0 : i32
    %c0_i32_0 = arith.constant 0 : i32
    return %arg0, %arg1, %arg2, %c0_i32 : i32, i32, i32, i32
  }
  func.func @transform_2(%arg0: i32, %arg1: i32, %arg2: i32) -> (i32, i32, i32, i32, i32) {
    %c0_i32 = arith.constant 0 : i32
    %c0_i32_0 = arith.constant 0 : i32
    %c0_i32_1 = arith.constant 0 : i32
    return %arg0, %arg1, %arg2, %c0_i32, %c0_i32_0 : i32, i32, i32, i32, i32
  }
  func.func @transform_3(%arg0: i32, %arg1: i32, %arg2: i32) -> (i32, i32, i32) {
    %c0_i32 = arith.constant 0 : i32
    %c0_i32_0 = arith.constant 0 : i32
    %c0_i32_1 = arith.constant 0 : i32
    return %arg1, %c0_i32, %c0_i32_0 : i32, i32, i32
  }
  func.func @transform_4(%arg0: i32, %arg1: i32, %arg2: i32) -> (i32, i32, i32) {
    %c0_i32 = arith.constant 0 : i32
    %c0_i32_0 = arith.constant 0 : i32
    %c0_i32_1 = arith.constant 0 : i32
    return %arg1, %c0_i32, %c0_i32_0 : i32, i32, i32
  }
  func.func @transform_5(%arg0: i32, %arg1: i32, %arg2: i32) -> (i32, i32, i32) {
    %c0_i32 = arith.constant 0 : i32
    %c0_i32_0 = arith.constant 0 : i32
    %c0_i32_1 = arith.constant 0 : i32
    return %arg1, %c0_i32, %c0_i32_0 : i32, i32, i32
  }
  func.func @transform_6(%arg0: i32, %arg1: i32, %arg2: i32) -> (i32, i32, i32, i32) {
    %c0_i32 = arith.constant 0 : i32
    %c0_i32_0 = arith.constant 0 : i32
    return %arg0, %arg1, %arg2, %c0_i32 : i32, i32, i32, i32
  }
}

</mosaic_0001>

<bundles_post_ra>
// kernel: selective_scan_pallas.1
= control target key start
LH: loop header
LB: loop body
LE: loop exit
PB: predicated region body
PF: predicated region fallthrough
CT: control target
= control target key end

     0   :  { %s1756_s21 = smov 0   ;;  %s1758_s22 = smov 0   ;;  %s2229_s0 = inlined_call_operand.vmem [shape: f32[2,4,256,8], index: 0, kind: input, shape index: {}]   ;;  %s2230_s1 = inlined_call_operand.vmem [shape: f32[2,4,256,8], index: 1, kind: input, shape index: {}]   ;;  %s2231_s2 = inlined_call_operand.vmem [shape: f32[2,4,32,32,8], index: 2, kind: input, shape index: {}]   ;;  %s2232_s3 = inlined_call_operand.vmem [shape: f32[4,16,8], index: 3, kind: input, shape index: {}]   ;;  %s2233_s4 = inlined_call_operand.vmem [shape: f32[4,1,8], index: 4, kind: input, shape index: {}]   ;;  %s2234_s5 = inlined_call_operand.vmem [shape: f32[4,1,8], index: 5, kind: input, shape index: {}]   ;;  %s2235_s6 = inlined_call_operand.vmem [shape: f32[2,4,256,8], index: 6, kind: output, shape index: {}]  }
   0x1   :  { %2237 = sst [smem:[#allocation9_spill]] %s2229_s0  ;;  %s1760_s23 = smov 0  }
   0x2   :  { %2238 = sst [smem:[#allocation10_spill]] %s2230_s1  ;;  %s1762_s24 = smov 0  }
   0x3   :  { %s1764_s25 = smov 0   ;;  %s1766_s26 = smov 0  }
   0x4   :  { %s1768_s27 = smov 0  }
   0x5 LB: > { %2239 = sst [smem:[#allocation5_spill]] %s1694_s26  ;;  %s28_s28 = sadd.s32 1, %s1686_s24  ;;  %s1698_s27 = sphi %s1768_s27, %s16_s27   ;;  %s1694_s26 = sphi %s1766_s26, %s2252_s26   ;;  %s1690_s25 = sphi %s1764_s25, %s2256_s25   ;;  %s1686_s24 = sphi %s1762_s24, %s2255_s24   ;;  %s1682_s23 = sphi %s1760_s23, %s2249_s23   ;;  %s1678_s22 = sphi %s1758_s22, %s2254_s22   ;;  %s1674_s21 = sphi %s1756_s21, %s2253_s21  }
   0x6   : > { %p29_p0 = scmp.ge.s32.totalorder %s28_s28, 2  ;;  %s31_s29 = sadd.s32 1, %s1690_s25 }
   0x7   : > { %p1396_p1 = scmp.ge.s32.totalorder %s1698_s27, 1  ;;  %p321_p2 = scmp.lt.s32.totalorder %s1698_s27, 17 }
   0x8   : > { %s2258_s28 = smov (%p29_p0, %s28_s28), 0  ;;  %s2260_s29 = smov (!%p29_p0, %s31_s29), %s1690_s25 }
   0x9   : > { %2240 = sst [smem:[#allocation6_spill]] %s2258_s28  ;;  %p322_p3 = pnand %p1396_p1, %p321_p2 }
   0xa   : > { %p33_p4 = scmp.ge.s32.totalorder %s2260_s29, 4  ;;  %s35_s30 = sadd.s32 1, %s1694_s26 }
   0xb   : > { %325 = sbr.rel (%p322_p3) target bundleno = 348 (0x15c), region = 44  ;;  %s1397_s7 = sshll.u32 (!%p322_p3), %s1674_s21, 4 }
   0xc   : > { %s2262_s29 = smov (%p33_p4, %s2260_s29), 0  ;;  %s2264_s30 = smov (!%p33_p4, %s35_s30), %s1694_s26 }
   0xd   : > { %2241 = sst [smem:[#allocation7_spill]] %s2262_s29  ;;  %p37_p5 = scmp.ge.s32.totalorder %s2264_s30, 2 }
   0xe   : > { %p406_p6 = scmp.lt.s32.totalorder (!%p322_p3), %s1682_s23, 1  ;;  %p408_p7 = scmp.lt.s32.totalorder (!%p322_p3), %s1678_s22, 3 }
   0xf   : > { %s2266_s30 = smov (%p37_p5, %s2264_s30), 0  ;;  %p410_p8 = scmp.lt.s32.totalorder (!%p322_p3), %s1397_s7, 31 }
  0x10   : > { %2242 = sst [smem:[#allocation8_spill]] %s2266_s30  ;;  %s2243_s0 = sld [smem:[#allocation9_spill]] (!%p322_p3) }
  0x11   : > { %s2244_s1 = sld [smem:[#allocation10_spill]] (!%p322_p3)  ;;  %p1416_p9 = scmp.ne.s32.totalorder (!%p322_p3), %s1674_s21, 0 }
  0x12   : > { %s2268_s23 = smov (!%p406_p6, %s1682_s23), 1  ;;  %s2270_s22 = smov (!%p408_p7, %s1678_s22), 3 }
  0x13   : > { %s2272_s7 = smov (!%p410_p8, %s1397_s7), 31  ;;  %s1398_s8 = sshll.u32 %s2270_s22, 5  ;;  %vm477_vm0 = vcmask (!%p1416_p9), 64512   ;;  %v1712_v0 = vmov (!%p1416_p9), 0.0  }
  0x14   : > { %s1399_s9 = sshll.u32 %s2268_s23, 7  ;;  %s413_s10 = sadd.s32 %s1398_s8, %s2272_s7  ;;  %478 = vst.msk [vmem:[#allocation2] sm:$0xff] (!%p1416_p9), %vm477_vm0, %v1712_v0  ;;  %479 = vst.msk [vmem:[#allocation2 + $0x8] sm:$0xff] (!%p1416_p9), %vm477_vm0, %v1712_v0 }
  0x15   : > { %s1406_s11 = sshll.u32 %s2272_s7, 2  ;;  %s415_s12 = sadd.s32 %s1399_s9, %s413_s10 }
  0x16   : > { %s1407_s13 = sshll.u32 %s2270_s22, 7  ;;  %s1805_s14 = sshll.u32 %s415_s12, 3 }
  0x17   : > { %s442_s15 = sadd.s32 %s1407_s13, %s1406_s11  ;;  %s1811_s18 = scalar_lea.vmem %s2243_s0, %s1805_s14 }
  0x18   : > { %s1817_s30 = scalar_lea.vmem %s2244_s1, %s1805_s14  ;;  %s1408_s8 = sshll.u32 %s2268_s23, 9 }
  0x19   : > { %s1423_s7 = sshll.u32 %s2270_s22, 4  ;;  %s444_s9 = sadd.s32 %s1408_s8, %s442_s15 }
  0x1a   : > { %s452_s29 = scalar_lea.vmem %s2232_s3, %s1423_s7  ;;  %s1409_s28 = sshll.u32 %s444_s9, 3 }
  0x1b   : > { %s455_s13 = scalar_lea.vmem %s2233_s4, %s2270_s22  ;;  %s1830_s0 = scalar_lea.vmem %s2231_s2, %s1409_s28 }
  0x1c   : > { %s458_s23 = scalar_lea.vmem %s2234_s5, %s2270_s22  ;;  %s471_s8 = scalar_lea.vmem %s2235_s6, %s1805_s14 }
  0x1d   : > { %476 = sbr.rel (%p1416_p9) target bundleno = 36 (0x24), region = 48 }
  0x24 PF: > { %v1841_v1 = vld [vmem:[%s452_s29] sm:$0xff]  ;;  %v1843_v2 = vld [vmem:[%s452_s29 + $0x8] sm:$0xff]  ;;  %v715_v4 = vlaneseq  ;;  %v502_v10 = vld [vmem:[%s1817_s30 + $0x10] sm:$0xff]  ;;  %vm666_vm1 = vcmask 64512   ;;  %s2045_s1 = smov 0  }
  0x25   : > { %v1845_v3 = vld [vmem:[%s455_s13] ss:$0 sm:$0xff]  ;;  %v501_v7 = vld [vmem:[%s1817_s30 + $0x8] sm:$0xff]  ;;  %v503_v11 = vld [vmem:[%s1817_s30 + $0x18] sm:$0xff] }
  0x26   : > { %v1847_v5 = vld [vmem:[%s458_s23] ss:$0 sm:$0xff]  ;;  %v1860_v13 = vshrl.u32 %v715_v4, 7  ;;  %v505_v19 = vld [vmem:[%s1817_s30 + $0x28] sm:$0xff]  ;;  %v506_v20 = vld [vmem:[%s1817_s30 + $0x30] sm:$0xff] }
  0x27   : > { %v500_v6 = vld [vmem:[%s1817_s30] sm:$0xff]  ;;  %v1855_v9 = vadd.f32 %v1847_v5, %v501_v7  ;;  %v1863_v14 = vadd.f32 %v1847_v5, %v502_v10  ;;  %v1866_v15 = vadd.f32 %v1847_v5, %v503_v11  ;;  %v507_v23 = vld [vmem:[%s1817_s30 + $0x38] sm:$0xff]  ;;  %v1881_v30 = vadd.f32 %v1847_v5, %v505_v19  ;;  %v509_v36 = vld [vmem:[%s1817_s30 + $0x48] sm:$0xff] }
  0x28   : > { %v1852_v8 = vadd.f32 %v1847_v5, %v500_v6  ;;  %v504_v12 = vld [vmem:[%s1817_s30 + $0x20] sm:$0xff]  ;;  %v1884_v31 = vadd.f32 %v1847_v5, %v506_v20  ;;  %v1887_v33 = vadd.f32 %v1847_v5, %v507_v23  ;;  %v510_v39 = vld [vmem:[%s1817_s30 + $0x50] sm:$0xff]  ;;  %v511_v40 = vld [vmem:[%s1817_s30 + $0x58] sm:$0xff]  ;;  %v1900_v45 = vadd.f32 %v1847_v5, %v509_v36 }
  0x29   : > { %v1869_v16 = vadd.f32 %v1847_v5, %v504_v12  ;;  %v555_v18 = vmin.f32 %v1855_v9, 20.0  ;;  %v556_v21 = vmin.f32 %v1863_v14, 20.0  ;;  %v557_v22 = vmin.f32 %v1866_v15, 20.0  ;;  %v508_v24 = vld [vmem:[%s1817_s30 + $0x40] sm:$0xff]  ;;  %v1913_v53 = vld [vmem:[#allocation2 + $0x8] sm:$0xff]   ;;  %v514_v4 = vld [vmem:[%s1817_s30 + $0x70] sm:$0xff] }
  0x2a   : > { %v554_v17 = vmin.f32 %v1852_v8, 20.0  ;;  %v1890_v34 = vadd.f32 %v1847_v5, %v508_v24  ;;  %v559_v35 = vmin.f32 %v1881_v30, 20.0  ;;  %v560_v37 = vmin.f32 %v1884_v31, 20.0  ;;  %v1909_v50 = vld [vmem:[#allocation2] sm:$0xff]   ;;  %v513_v62 = vld [vmem:[%s1817_s30 + $0x68] sm:$0xff]  ;;  %v515_v10 = vld [vmem:[%s1817_s30 + $0x78] sm:$0xff] }
  0x2b   : > { %v572_v26 = vmul.f32 1.442695, %v555_v18  ;;  %v558_v27 = vmin.f32 %v1869_v16, 20.0  ;;  %v574_v28 = vmul.f32 1.442695, %v556_v21  ;;  %v561_v38 = vmin.f32 %v1887_v33, 20.0 }
  0x2c   : > { %v570_v25 = vmul.f32 1.442695, %v554_v17  ;;  %v576_v29 = vmul.f32 1.442695, %v557_v22  ;;  %v580_v41 = vmul.f32 1.442695, %v559_v35  ;;  %v1903_v47 = vadd.f32 %v1847_v5, %v510_v39 }
  0x2d   : > { %v578_v32 = vmul.f32 1.442695, %v558_v27  ;;  %v562_v42 = vmin.f32 %v1890_v34, 20.0  ;;  %v582_v43 = vmul.f32 1.442695, %v560_v37  ;;  %v1906_v48 = vadd.f32 %v1847_v5, %v511_v40  ;;  %v512_v52 = vld [vmem:[%s1817_s30 + $0x60] sm:$0xff] }
  0x2e   : > { %1513 = vpow2.f32 %v570_v25  ;;  %v584_v44 = vmul.f32 1.442695, %v561_v38  ;;  %v563_v49 = vmin.f32 %v1900_v45, 20.0  ;;  %v564_v51 = vmin.f32 %v1903_v47, 20.0 }
  0x2f   : > { %1515 = vpow2.f32 %v572_v26  ;;  %v586_v46 = vmul.f32 1.442695, %v562_v42  ;;  %v565_v55 = vmin.f32 %v1906_v48, 20.0  ;;  %v1917_v59 = vadd.f32 %v1847_v5, %v512_v52 }
  0x30   : > { %1517 = vpow2.f32 %v574_v28  ;;  %v588_v54 = vmul.f32 1.442695, %v563_v49  ;;  %v590_v56 = vmul.f32 1.442695, %v564_v51  ;;  %v1924_v18 = vadd.f32 %v1847_v5, %v513_v62  ;;  %v486_v62 = vld [vmem:[%s1811_s18 + $0x10] sm:$0xff] }
  0x31   : > { %1519 = vpow2.f32 %v576_v29  ;;  %v592_v58 = vmul.f32 1.442695, %v565_v55  ;;  %v566_v17 = vmin.f32 %v1917_v59, 20.0  ;;  %v1927_v21 = vadd.f32 %v1847_v5, %v514_v4 }
  0x32   : > { %1521 = vpow2.f32 %v578_v32  ;;  %v1930_v24 = vadd.f32 %v1847_v5, %v515_v10  ;;  %v567_v32 = vmin.f32 %v1924_v18, 20.0  ;;  %vm538_vm2 = vcmp.gt.f32.partialorder %v1852_v8, 20.0 }
  0x33   : > { %1523 = vpow2.f32 %v580_v41  ;;  %v594_v29 = vmul.f32 1.442695, %v566_v17  ;;  %v568_v36 = vmin.f32 %v1927_v21, 20.0  ;;  %vm539_vm3 = vcmp.gt.f32.partialorder %v1855_v9, 20.0  ;;  %v488_v17 = vld [vmem:[%s1811_s18 + $0x20] sm:$0xff] }
  0x34   : > { %1525 = vpow2.f32 %v582_v43  ;;  %v569_v38 = vmin.f32 %v1930_v24, 20.0  ;;  %v596_v42 = vmul.f32 1.442695, %v567_v32  ;;  %vm540_vm4 = vcmp.gt.f32.partialorder %v1863_v14, 20.0 }
  0x35   : > { %1527 = vpow2.f32 %v584_v44  ;;  %vm541_vm5 = vcmp.gt.f32.partialorder %v1866_v15, 20.0  ;;  %vm542_vm6 = vcmp.gt.f32.partialorder %v1869_v16, 20.0  ;;  %vm543_vm7 = vcmp.gt.f32.partialorder %v1881_v30, 20.0 }
  0x36   : > { %1529 = vpow2.f32 %v586_v46  ;;  %v598_v46 = vmul.f32 1.442695, %v568_v36  ;;  %v600_v52 = vmul.f32 1.442695, %v569_v38  ;;  %vm544_vm8 = vcmp.gt.f32.partialorder %v1884_v31, 20.0 }
  0x37   : > { %1531 = vpow2.f32 %v588_v54  ;;  %v484_v54 = vld [vmem:[%s1811_s18] sm:$0xff]  ;;  %vm545_vm9 = vcmp.gt.f32.partialorder %v1887_v33, 20.0  ;;  %vm546_vm10 = vcmp.gt.f32.partialorder %v1890_v34, 20.0  ;;  %vm547_vm11 = vcmp.gt.f32.partialorder %v1900_v45, 20.0 }
  0x38   : > { %v1514_v57 = vpop.eup %1513  ;;  %1533 = vpow2.f32 %v590_v56  ;;  %vm548_vm12 = vcmp.gt.f32.partialorder %v1903_v47, 20.0  ;;  %vm549_vm13 = vcmp.gt.f32.partialorder %v1906_v48, 20.0  ;;  %vm550_vm14 = vcmp.gt.f32.partialorder %v1917_v59, 20.0 }
  0x39   : > { %v1516_v60 = vpop.eup %1515  ;;  %v602_v61 = vadd.f32 1.0, %v1514_v57  ;;  %1535 = vpow2.f32 %v592_v58  ;;  %v485_v57 = vld [vmem:[%s1811_s18 + $0x8] sm:$0xff]  ;;  %vm551_vm15 = vcmp.gt.f32.partialorder %v1924_v18, 20.0  ;;  %vm552_vm0 = vcmp.gt.f32.partialorder %v1927_v21, 20.0 }
  0x3a   : > { %v1518_v63 = vpop.eup %1517  ;;  %v603_v0 = vadd.f32 1.0, %v1516_v60 }
  0x3b   : > { %v1520_v6 = vpop.eup %1519  ;;  %1537 = vlog2.f32 %v602_v61  ;;  %v604_v7 = vadd.f32 1.0, %v1518_v63 }
  0x3c   : > { %v1522_v11 = vpop.eup %1521  ;;  %1539 = vlog2.f32 %v603_v0  ;;  %v605_v12 = vadd.f32 1.0, %v1520_v6 }
  0x3d   : > { %v1524_v19 = vpop.eup %1523  ;;  %1541 = vlog2.f32 %v604_v7  ;;  %v606_v20 = vadd.f32 1.0, %v1522_v11  ;;  %v487_v7 = vld [vmem:[%s1811_s18 + $0x18] sm:$0xff] }
  0x3e   : > { %v1526_v22 = vpop.eup %1525  ;;  %1543 = vlog2.f32 %v605_v12  ;;  %v607_v23 = vadd.f32 1.0, %v1524_v19 }
  0x3f   : > { %v1528_v25 = vpop.eup %1527  ;;  %1545 = vlog2.f32 %v606_v20  ;;  %v608_v26 = vadd.f32 1.0, %v1526_v22 }
  0x40   : > { %v1530_v27 = vpop.eup %1529  ;;  %1547 = vlog2.f32 %v607_v23  ;;  %v609_v28 = vadd.f32 1.0, %v1528_v25  ;;  %v489_v23 = vld [vmem:[%s1811_s18 + $0x28] sm:$0xff] }
  0x41   : > { %1549 = vlog2.f32 %v608_v26  ;;  %v610_v35 = vadd.f32 1.0, %v1530_v27  ;;  %v1532_v37 = vpop.eup %1531  ;;  %v490_v27 = vld [vmem:[%s1811_s18 + $0x30] sm:$0xff] }
  0x42   : > { %1551 = vlog2.f32 %v609_v28  ;;  %v1534_v39 = vpop.eup %1533  ;;  %v611_v5 = vadd.f32 1.0, %v1532_v37 }
  0x43   : > { %1553 = vlog2.f32 %v610_v35  ;;  %v1536_v40 = vpop.eup %1535  ;;  %v612_v41 = vadd.f32 1.0, %v1534_v39  ;;  %v491_v35 = vld [vmem:[%s1811_s18 + $0x38] sm:$0xff] }
  0x44   : > { %1555 = vpow2.f32 %v594_v29  ;;  %v613_v44 = vadd.f32 1.0, %v1536_v40 }
  0x45   : > { %v1538_v43 = vpop.eup %1537  ;;  %1557 = vlog2.f32 %v611_v5 }
  0x46   : > { %v1540_v49 = vpop.eup %1539  ;;  %v619_v51 = vmul.f32 0.6931472, %v1538_v43  ;;  %1559 = vlog2.f32 %v612_v41 }
  0x47   : > { %v1542_v55 = vpop.eup %1541  ;;  %v621_v56 = vmul.f32 0.6931472, %v1540_v49  ;;  %1561 = vlog2.f32 %v613_v44 }
  0x48   : > { %v1544_v58 = vpop.eup %1543  ;;  %v650_v60 = vsel %vm538_vm2, %v1852_v8, %v619_v51  ;;  %v623_v61 = vmul.f32 0.6931472, %v1542_v55  ;;  %1563 = vpow2.f32 %v596_v42  ;;  %vm553_vm2 = vcmp.gt.f32.partialorder %v1930_v24, 20.0 }
  0x49   : > { %v1546_v63 = vpop.eup %1545  ;;  %667 = vst.msk [vmem:[#allocation3] sm:$0xff] %vm666_vm1, %v650_v60  ;;  %v651_v0 = vsel %vm539_vm3, %v1855_v9, %v621_v56  ;;  %v625_v4 = vmul.f32 0.6931472, %v1544_v58  ;;  %1565 = vpow2.f32 %v598_v46  ;;  %v683_v6 = vmul.f32 %v650_v60, %v484_v54  ;;  %v493_v46 = vld [vmem:[%s1811_s18 + $0x48] sm:$0xff]  ;;  %v494_v54 = vld [vmem:[%s1811_s18 + $0x50] sm:$0xff] }
  0x4a   : > { %v1548_v10 = vpop.eup %1547  ;;  %668 = vst.msk [vmem:[#allocation3 + $0x8] sm:$0xff] %vm666_vm1, %v651_v0  ;;  %v652_v8 = vsel %vm540_vm4, %v1863_v14, %v623_v61  ;;  %v627_v11 = vmul.f32 0.6931472, %v1546_v63  ;;  %1567 = vpow2.f32 %v600_v52  ;;  %v684_v12 = vmul.f32 %v651_v0, %v485_v57  ;;  %v495_v57 = vld [vmem:[%s1811_s18 + $0x58] sm:$0xff] }
  0x4b   : > { %v1550_v19 = vpop.eup %1549  ;;  %669 = vst.msk [vmem:[#allocation3 + $0x10] sm:$0xff] %vm666_vm1, %v652_v8  ;;  %v653_v9 = vsel %vm541_vm5, %v1866_v15, %v625_v4  ;;  %v629_v20 = vmul.f32 0.6931472, %v1548_v10  ;;  %699 = vst.msk [vmem:[#allocation4] sm:$0xff] %vm666_vm1, %v683_v6  ;;  %v685_v22 = vmul.f32 %v652_v8, %v486_v62  ;;  %v496_v10 = vld [vmem:[%s1811_s18 + $0x60] sm:$0xff] }
  0x4c   : > { %v1552_v14 = vpop.eup %1551  ;;  %670 = vst.msk [vmem:[#allocation3 + $0x18] sm:$0xff] %vm666_vm1, %v653_v9  ;;  %v654_v25 = vsel %vm542_vm6, %v1869_v16, %v627_v11  ;;  %v631_v26 = vmul.f32 0.6931472, %v1550_v19  ;;  %700 = vst.msk [vmem:[#allocation4 + $0x8] sm:$0xff] %vm666_vm1, %v684_v12  ;;  %v686_v15 = vmul.f32 %v653_v9, %v487_v7  ;;  %v497_v9 = vld [vmem:[%s1811_s18 + $0x68] sm:$0xff] }
  0x4d   : > { %v1554_v28 = vpop.eup %1553  ;;  %671 = vst.msk [vmem:[#allocation3 + $0x20] sm:$0xff] %vm666_vm1, %v654_v25  ;;  %v655_v29 = vsel %vm543_vm7, %v1881_v30, %v629_v20  ;;  %v633_v32 = vmul.f32 0.6931472, %v1552_v14  ;;  %701 = vst.msk [vmem:[#allocation4 + $0x10] sm:$0xff] %vm666_vm1, %v685_v22  ;;  %v687_v16 = vmul.f32 %v654_v25, %v488_v17  ;;  %v492_v30 = vld [vmem:[%s1811_s18 + $0x40] sm:$0xff]  ;;  %v499_v25 = vld [vmem:[%s1811_s18 + $0x78] sm:$0xff] }
  0x4e   : > { %v1556_v36 = vpop.eup %1555  ;;  %672 = vst.msk [vmem:[#allocation3 + $0x28] sm:$0xff] %vm666_vm1, %v655_v29  ;;  %v656_v37 = vsel %vm544_vm8, %v1884_v31, %v631_v26  ;;  %v635_v38 = vmul.f32 0.6931472, %v1554_v28  ;;  %702 = vst.msk [vmem:[#allocation4 + $0x18] sm:$0xff] %vm666_vm1, %v686_v15  ;;  %v688_v39 = vmul.f32 %v655_v29, %v489_v23  ;;  %v498_v23 = vld [vmem:[%s1811_s18 + $0x70] sm:$0xff] }
  0x4f   : > { %v1558_v5 = vpop.eup %1557  ;;  %673 = vst.msk [vmem:[#allocation3 + $0x30] sm:$0xff] %vm666_vm1, %v656_v37  ;;  %v657_v40 = vsel %vm545_vm9, %v1887_v33, %v633_v32  ;;  %v614_v41 = vadd.f32 1.0, %v1556_v36  ;;  %703 = vst.msk [vmem:[#allocation4 + $0x20] sm:$0xff] %vm666_vm1, %v687_v16  ;;  %v689_v42 = vmul.f32 %v656_v37, %v490_v27 }
  0x50   : > { %v1560_v31 = vpop.eup %1559  ;;  %674 = vst.msk [vmem:[#allocation3 + $0x38] sm:$0xff] %vm666_vm1, %v657_v40  ;;  %v658_v43 = vsel %vm546_vm10, %v1890_v34, %v635_v38  ;;  %v637_v44 = vmul.f32 0.6931472, %v1558_v5  ;;  %704 = vst.msk [vmem:[#allocation4 + $0x28] sm:$0xff] %vm666_vm1, %v688_v39  ;;  %v690_v33 = vmul.f32 %v657_v40, %v491_v35 }
  0x51   : > { %v1562_v49 = vpop.eup %1561  ;;  %675 = vst.msk [vmem:[#allocation3 + $0x40] sm:$0xff] %vm666_vm1, %v658_v43  ;;  %v639_v51 = vmul.f32 0.6931472, %v1560_v31  ;;  %1569 = vlog2.f32 %v614_v41  ;;  %705 = vst.msk [vmem:[#allocation4 + $0x30] sm:$0xff] %vm666_vm1, %v689_v42  ;;  %v691_v52 = vmul.f32 %v658_v43, %v492_v30 }
  0x52   : > { %v1564_v34 = vpop.eup %1563  ;;  %v659_v55 = vsel %vm547_vm11, %v1900_v45, %v637_v44  ;;  %v641_v56 = vmul.f32 0.6931472, %v1562_v49  ;;  %706 = vst.msk [vmem:[#allocation4 + $0x38] sm:$0xff] %vm666_vm1, %v690_v33 }
  0x53   : > { %v1566_v58 = vpop.eup %1565  ;;  %676 = vst.msk [vmem:[#allocation3 + $0x48] sm:$0xff] %vm666_vm1, %v659_v55  ;;  %v660_v60 = vsel %vm548_vm12, %v1903_v47, %v639_v51  ;;  %v615_v61 = vadd.f32 1.0, %v1564_v34  ;;  %707 = vst.msk [vmem:[#allocation4 + $0x40] sm:$0xff] %vm666_vm1, %v691_v52  ;;  %v692_v62 = vmul.f32 %v659_v55, %v493_v46 }
  0x54   : > { %v1568_v63 = vpop.eup %1567  ;;  %677 = vst.msk [vmem:[#allocation3 + $0x50] sm:$0xff] %vm666_vm1, %v660_v60  ;;  %v661_v45 = vsel %vm549_vm13, %v1906_v48, %v641_v56  ;;  %v616_v0 = vadd.f32 1.0, %v1566_v58  ;;  %v693_v4 = vmul.f32 %v660_v60, %v494_v54 }
  0x55   : > { %678 = vst.msk [vmem:[#allocation3 + $0x58] sm:$0xff] %vm666_vm1, %v661_v45  ;;  %1571 = vlog2.f32 %v615_v61  ;;  %v617_v6 = vadd.f32 1.0, %v1568_v63  ;;  %708 = vst.msk [vmem:[#allocation4 + $0x48] sm:$0xff] %vm666_vm1, %v692_v62  ;;  %v694_v47 = vmul.f32 %v661_v45, %v495_v57 }
  0x56   : > { %1573 = vlog2.f32 %v616_v0  ;;  %709 = vst.msk [vmem:[#allocation4 + $0x50] sm:$0xff] %vm666_vm1, %v693_v4 }
  0x57   : > { %1575 = vlog2.f32 %v617_v6  ;;  %710 = vst.msk [vmem:[#allocation4 + $0x58] sm:$0xff] %vm666_vm1, %v694_v47 }
  0x5b   : > { %v1570_v7 = vpop.eup %1569 }
  0x5c   : > { %v643_v48 = vmul.f32 0.6931472, %v1570_v7 }
  0x5e   : > { %v662_v8 = vsel %vm550_vm14, %v1917_v59, %v643_v48 }
  0x5f   : > { %v1572_v11 = vpop.eup %1571  ;;  %679 = vst.msk [vmem:[#allocation3 + $0x60] sm:$0xff] %vm666_vm1, %v662_v8  ;;  %v695_v12 = vmul.f32 %v662_v8, %v496_v10 }
  0x60   : > { %v1574_v17 = vpop.eup %1573  ;;  %v645_v19 = vmul.f32 0.6931472, %v1572_v11 }
  0x61   : > { %v1576_v20 = vpop.eup %1575  ;;  %v647_v22 = vmul.f32 0.6931472, %v1574_v17  ;;  %711 = vst.msk [vmem:[#allocation4 + $0x60] sm:$0xff] %vm666_vm1, %v695_v12 }
  0x62   : > { %v663_v59 = vsel %vm551_vm15, %v1924_v18, %v645_v19  ;;  %v649_v14 = vmul.f32 0.6931472, %v1576_v20 }
  0x63   : > { %680 = vst.msk [vmem:[#allocation3 + $0x68] sm:$0xff] %vm666_vm1, %v663_v59  ;;  %v664_v26 = vsel %vm552_vm0, %v1927_v21, %v647_v22  ;;  %v696_v15 = vmul.f32 %v663_v59, %v497_v9 }
  0x64   : > { %681 = vst.msk [vmem:[#allocation3 + $0x70] sm:$0xff] %vm666_vm1, %v664_v26  ;;  %v665_v27 = vsel %vm553_vm2, %v1930_v24, %v649_v14  ;;  %v697_v28 = vmul.f32 %v664_v26, %v498_v23 }
  0x65   : > { %682 = vst.msk [vmem:[#allocation3 + $0x78] sm:$0xff] %vm666_vm1, %v665_v27  ;;  %712 = vst.msk [vmem:[#allocation4 + $0x68] sm:$0xff] %vm666_vm1, %v696_v15  ;;  %v698_v29 = vmul.f32 %v665_v27, %v499_v25 }
  0x66   : > { %713 = vst.msk [vmem:[#allocation4 + $0x70] sm:$0xff] %vm666_vm1, %v697_v28 }
  0x67   : > { %714 = vst.msk [vmem:[#allocation4 + $0x78] sm:$0xff] %vm666_vm1, %v698_v29 }
  0x68 LB: >> { %v1713_v18 = vmov 0   ;;  %s1419_s21 = sshll.u32 %s1710_s1, 5  ;;  %v1714_v35 = vmov 1   ;;  %v1715_v36 = vmov 2   ;;  %v1716_v37 = vmov 3   ;;  %s2059_s26 = sshll.u32 %s1710_s1, 3  ;;  %s1710_s1 = sphi %s2045_s1, %s724_s1   ;;  %v1706_v50 = vphi %v1909_v50, %v2248_v50   ;;  %v1702_v53 = vphi %v1913_v53, %v2247_v53  }
  0x69   : >> { %1578 = vset.pattern.permute.xlu1 %v1713_v18  ;;  %1577 = vset.pattern.permute.xlu0 %v1713_v18  ;;  %s735_s22 = scalar_lea.vmem %s1830_s0, %s1419_s21  ;;  %v1717_v38 = vmov 4   ;;  %v1718_v39 = vmov 5   ;;  %v1719_v30 = vmov 6   ;;  %v1720_v5 = vmov 7   ;;  %s728_s28 = scalar_lea.vmem [#allocation3], %s2059_s26 }
  0x6a   : >> { %v738_v21 = vld [vmem:[%s735_s22 + $0x10] sm:$0xff]  ;;  %v736_v24 = vld [vmem:[%s735_s22] sm:$0xff]  ;;  %v739_v32 = vld [vmem:[%s735_s22 + $0x18] sm:$0xff]  ;;  %v742_v40 = vsub.s32 0, %v1860_v13  ;;  %v798_v33 = vsub.s32 1, %v1860_v13  ;;  %v850_v55 = vsub.s32 2, %v1860_v13  ;;  %s732_s30 = scalar_lea.vmem %s1811_s18, %s2059_s26  ;;  %s1168_s10 = scalar_lea.vmem %s471_s8, %s2059_s26 }
  0x6b   : >> { %772 = vperm.xlu1 %1578, %v738_v21   ;;  %754 = vperm.xlu0 %1577, %v736_v24   ;;  %v737_v16 = vld [vmem:[%s735_s22 + $0x8] sm:$0xff]  ;;  %s730_s29 = scalar_lea.vmem [#allocation4], %s2059_s26  ;;  %v902_v6 = vsub.s32 3, %v1860_v13  ;;  %v954_v59 = vsub.s32 4, %v1860_v13  ;;  %vm843_vm3 = vcmp.eq.s32.totalorder %v1860_v13, 1  ;;  %vm791_vm4 = vcmp.eq.s32.totalorder %v1860_v13, 0 }
  0x6c   : >> { %v2065_v42 = vld [vmem:[%s728_s28] sm:$0xff]  ;;  %vm895_vm5 = vcmp.eq.s32.totalorder %v1860_v13, 2  ;;  %vm947_vm6 = vcmp.eq.s32.totalorder %v1860_v13, 3  ;;  %vm999_vm7 = vcmp.eq.s32.totalorder %v1860_v13, 4  ;;  %vm1051_vm8 = vcmp.eq.s32.totalorder %v1860_v13, 5  ;;  %s724_s1 = sadd.s32 1, %s1710_s1  }
  0x6d   : >> { %v743_v31 = vrot.slane %v2065_v42, %v742_v40  ;;  %v799_v51 = vrot.slane %v2065_v42, %v798_v33  ;;  %v851_v61 = vrot.slane %v2065_v42, %v850_v55  ;;  %v903_v12 = vrot.slane %v2065_v42, %v902_v6  ;;  %p721_p10 = scmp.ge.s32.totalorder %s724_s1, 16  }
  0x6e   : >> { %v2083_v0 = vld [vmem:[%s730_s29] sm:$0xff]  ;;  %v955_v18 = vrot.slane %v2065_v42, %v954_v59  ;;  %vm1103_vm9 = vcmp.eq.s32.totalorder %v1860_v13, 6  ;;  %vm1155_vm10 = vcmp.eq.s32.totalorder %v1860_v13, 7 }
  0x6f   : >> { %777 = vperm.xlu1 %1578, %v739_v32   ;;  %759 = vperm.xlu0 %1577, %v737_v16   ;;  %v745_v44 = vmul.f32 %v743_v31, %v1843_v2  ;;  %v744_v52 = vmul.f32 %v743_v31, %v1841_v1  ;;  %v801_v34 = vmul.f32 %v799_v51, %v1843_v2 }
  0x70   : >> { %v800_v58 = vmul.f32 %v799_v51, %v1841_v1  ;;  %v853_v4 = vmul.f32 %v851_v61, %v1843_v2  ;;  %v765_v48 = vrot.slane %v2083_v0, %v742_v40  ;;  %v852_v10 = vmul.f32 %v851_v61, %v1841_v1 }
  0x71   : >> { %v748_v46 = vmul.f32 1.442695, %v745_v44  ;;  %v746_v56 = vmul.f32 1.442695, %v744_v52  ;;  %v804_v60 = vmul.f32 1.442695, %v801_v34  ;;  %v905_v9 = vmul.f32 %v903_v12, %v1843_v2 }
  0x72   : >> { %v802_v45 = vmul.f32 1.442695, %v800_v58  ;;  %v856_v11 = vmul.f32 1.442695, %v853_v4  ;;  %v854_v22 = vmul.f32 1.442695, %v852_v10  ;;  %v819_v25 = vrot.slane %v2083_v0, %v798_v33 }
  0x73   : >> { %1580 = vset.pattern.permute.xlu1 %v1714_v35  ;;  %1579 = vset.pattern.permute.xlu0 %v1714_v35  ;;  %1600 = vpow2.f32 %v748_v46  ;;  %v904_v29 = vmul.f32 %v903_v12, %v1841_v1  ;;  %v871_v40 = vrot.slane %v2083_v0, %v850_v55  ;;  %v956_v51 = vmul.f32 %v955_v18, %v1841_v1 }
  0x74   : >> { %813 = vperm.xlu1 %1580, %v737_v16   ;;  %809 = vperm.xlu0 %1579, %v736_v24   ;;  %1602 = vpow2.f32 %v746_v56 }
  0x75   : >> { %1604 = vpow2.f32 %v804_v60  ;;  %v958_v55 = vmul.f32 1.442695, %v956_v51 }
  0x76   : >> { %1606 = vpow2.f32 %v802_v45 }
  0x77   : >> { %1608 = vpow2.f32 %v856_v11 }
  0x78   : >> { %1581 = vset.pattern.permute.xlu1 %v1715_v36  ;;  %829 = vperm.xlu0 %1579, %v739_v32   ;;  %1610 = vpow2.f32 %v854_v22 }
  0x79   : >> { %861 = vperm.xlu1 %1581, %v736_v24  }
  0x7c   : >> { %1585 = vset.pattern.permute.xlu0 %v1715_v36 }
  0x7d   : >> { %1582 = vset.pattern.permute.xlu1 %v1716_v37  ;;  %865 = vperm.xlu0 %1585, %v737_v16   ;;  %v1601_v47 = vpop.eup %1600 }
  0x7e   : >> { %913 = vperm.xlu1 %1582, %v736_v24   ;;  %v751_v17 = vmul.f32 %v1702_v53, %v1601_v47  ;;  %v1603_v20 = vpop.eup %1602  ;;  %v908_v53 = vmul.f32 1.442695, %v905_v9  ;;  %v923_v47 = vrot.slane %v2083_v0, %v902_v6 }
  0x7f   : >> { %v1605_v26 = vpop.eup %1604  ;;  %v750_v15 = vmul.f32 %v1706_v50, %v1603_v20  ;;  %v957_v50 = vmul.f32 %v955_v18, %v1843_v2 }
  0x80   : >> { %1612 = vpow2.f32 %v908_v53 }
  0x81   : >> { %877 = vperm.xlu0 %1585, %v738_v21   ;;  %v960_v33 = vmul.f32 1.442695, %v957_v50 }
  0x82   : >> { %917 = vperm.xlu1 %1582, %v737_v16  }
  0x85   : >> { %1589 = vset.pattern.permute.xlu0 %v1716_v37 }
  0x86   : >> { %1583 = vset.pattern.permute.xlu1 %v1717_v38  ;;  %933 = vperm.xlu0 %1589, %v739_v32  }
  0x87   : >> { %969 = vperm.xlu1 %1583, %v737_v16  }
  0x8a   : >> { %1590 = vset.pattern.permute.xlu0 %v1717_v38 }
  0x8b   : >> { %1584 = vset.pattern.permute.xlu1 %v1714_v35  ;;  %965 = vperm.xlu0 %1590, %v736_v24  }
  0x8c   : >> { %825 = vperm.xlu1 %1584, %v738_v21  }
  0x8f   : >> { %981 = vperm.xlu0 %1590, %v738_v21  }
  0x90   : >> { %1586 = vset.pattern.permute.xlu1 %v1718_v39 }
  0x91   : >> { %1017 = vperm.xlu1 %1586, %v736_v24  }
  0x93   : >> { %1594 = vset.pattern.permute.xlu0 %v1718_v39 }
  0x94   : >> { %1037 = vperm.xlu0 %1594, %v739_v32  }
  0x95   : >> { %1021 = vperm.xlu1 %1586, %v737_v16  }
  0x98   : >> { %1596 = vset.pattern.permute.xlu0 %v1719_v30 }
  0x99   : >> { %1587 = vset.pattern.permute.xlu1 %v1715_v36  ;;  %1085 = vperm.xlu0 %1596, %v738_v21   ;;  %v1006_v36 = vsub.s32 5, %v1860_v13 }
  0x9a   : >> { %881 = vperm.xlu1 %1587, %v739_v32  }
  0x9b   : >> { %v1007_v46 = vrot.slane %v2065_v42, %v1006_v36 }
  0x9d   : >> { %1599 = vset.pattern.permute.xlu0 %v1720_v5  ;;  %v1009_v58 = vmul.f32 %v1007_v46, %v1843_v2  ;;  %v1008_v10 = vmul.f32 %v1007_v46, %v1841_v1 }
  0x9e   : >> { %1588 = vset.pattern.permute.xlu1 %v1716_v37  ;;  %1141 = vperm.xlu0 %1599, %v739_v32   ;;  %v906_v37 = vmul.f32 1.442695, %v904_v29  ;;  %v1110_v29 = vsub.s32 7, %v1860_v13 }
  0x9f   : >> { %929 = vperm.xlu1 %1588, %v738_v21  }
  0xa0   : >> { %1614 = vpow2.f32 %v906_v37 }
  0xa1   : >> { %1616 = vpow2.f32 %v960_v33 }
  0xa2   : >> { %1618 = vpow2.f32 %v958_v55 }
  0xa3   : >> { %1591 = vset.pattern.permute.xlu1 %v1719_v30 }
  0xa4   : >> { %1069 = vperm.xlu1 %1591, %v736_v24  }
  0xa8   : >> { %1073 = vperm.xlu1 %1591, %v737_v16  }
  0xac   : >> { %1592 = vset.pattern.permute.xlu1 %v1717_v38 }
  0xad   : >> { %985 = vperm.xlu1 %1592, %v739_v32  }
  0xb1   : >> { %1593 = vset.pattern.permute.xlu1 %v1718_v39 }
  0xb2   : >> { %1033 = vperm.xlu1 %1593, %v738_v21  }
  0xb6   : >> { %1595 = vset.pattern.permute.xlu1 %v1720_v5 }
  0xb7   : >> { %1121 = vperm.xlu1 %1595, %v736_v24   ;;  %v1607_v24 = vpop.eup %1606 }
  0xb8   : >> { %v1609_v44 = vpop.eup %1608 }
  0xbb   : >> { %1125 = vperm.xlu1 %1595, %v737_v16  }
  0xbf   : >> { %1597 = vset.pattern.permute.xlu1 %v1719_v30 }
  0xc0   : >> { %1089 = vperm.xlu1 %1597, %v739_v32  }
  0xc4   : >> { %1598 = vset.pattern.permute.xlu1 %v1720_v5 }
  0xc5   : >> { %1137 = vperm.xlu1 %1598, %v738_v21  }
  0xea   : >> { %v2062_v41 = vpop.permute.xlu1 %772  ;;  %v755_v54 = vpop.permute.xlu0 %754 }
  0xeb   : >> { %v766_v27 = vmul.f32 %v765_v48, %v755_v54  ;;  %v1611_v54 = vpop.eup %1610 }
  0xed   : >> { %v2108_v35 = vadd.f32 %v766_v27, %v750_v15 }
  0xee   : >> { %v2068_v43 = vpop.permute.xlu1 %777  ;;  %v760_v62 = vpop.permute.xlu0 %759 }
  0xef   : >> { %v767_v19 = vmul.f32 %v765_v48, %v760_v62  ;;  %v806_v38 = vmul.f32 %v1607_v24, %v2108_v35  ;;  %v1613_v62 = vpop.eup %1612  ;;  %v1058_v48 = vsub.s32 6, %v1860_v13  ;;  %v780_v51 = vmul.f32 %v2062_v41, %v2108_v35 }
  0xf0   : >> { %v1615_v9 = vpop.eup %1614 }
  0xf1   : >> { %v2097_v14 = vadd.f32 %v767_v19, %v751_v17  ;;  %v1059_v22 = vrot.slane %v2065_v42, %v1058_v48  ;;  %v1617_v15 = vpop.eup %1616 }
  0xf3   : >> { %v814_v49 = vpop.permute.xlu1 %813  ;;  %v810_v8 = vpop.permute.xlu0 %809  ;;  %v807_v16 = vmul.f32 %v1605_v26, %v2097_v14 }
  0xf4   : >> { %v821_v32 = vmul.f32 %v819_v25, %v814_v49  ;;  %v820_v39 = vmul.f32 %v819_v25, %v810_v8  ;;  %v1012_v8 = vmul.f32 1.442695, %v1009_v58  ;;  %v975_v25 = vrot.slane %v2083_v0, %v954_v59  ;;  %v1619_v59 = vpop.eup %1618 }
  0xf6   : >> { %v823_v5 = vadd.f32 %v821_v32, %v807_v16  ;;  %v822_v52 = vadd.f32 %v820_v39, %v806_v38  ;;  %1620 = vpow2.f32 %v1012_v8  ;;  %v1061_v16 = vmul.f32 %v1059_v22, %v1843_v2 }
  0xf7   : >> { %v2101_v28 = vpop.permute.xlu0 %829  ;;  %v781_v38 = vmul.f32 %v2068_v43, %v2097_v14 }
  0xf8   : >> { %v2076_v57 = vpop.permute.xlu1 %861  ;;  %v859_v34 = vmul.f32 %v1609_v44, %v823_v5  ;;  %v858_v45 = vmul.f32 %v1611_v54, %v822_v52  ;;  %v1064_v33 = vmul.f32 1.442695, %v1061_v16  ;;  %v833_v43 = vmul.f32 %v2101_v28, %v823_v5 }
  0xf9   : >> { %v872_v4 = vmul.f32 %v871_v40, %v2076_v57  ;;  %v1010_v57 = vmul.f32 1.442695, %v1008_v10  ;;  %v782_v28 = vsel %vm666_vm1, %v780_v51, 0.0 }
  0xfa   : >> { %v835_v5 = vsel %vm666_vm1, %v833_v43, 0.0 }
  0xfb   : >> { %v874_v19 = vadd.f32 %v872_v4, %v858_v45  ;;  %1622 = vpow2.f32 %v1010_v57 }
  0xfc   : >> { %v866_v30 = vpop.permute.xlu0 %865 }
  0xfd   : >> { %v2080_v63 = vpop.permute.xlu1 %913  ;;  %v873_v49 = vmul.f32 %v871_v40, %v866_v30  ;;  %v910_v27 = vmul.f32 %v1615_v9, %v874_v19 }
  0xfe   : >> { %v924_v53 = vmul.f32 %v923_v47, %v2080_v63  ;;  %v1111_v63 = vrot.slane %v2065_v42, %v1110_v29  ;;  %v783_v42 = vsel %vm666_vm1, %v781_v38, 0.0 }
  0xff   : >> { %v875_v60 = vadd.f32 %v873_v49, %v859_v34 }
 0x100   : >> { %v878_v61 = vpop.permute.xlu0 %877  ;;  %v926_v50 = vadd.f32 %v924_v53, %v910_v27  ;;  %v1113_v46 = vmul.f32 %v1111_v63, %v1843_v2  ;;  %v1621_v49 = vpop.eup %1620  ;;  %v1112_v4 = vmul.f32 %v1111_v63, %v1841_v1 }
 0x101   : >> { %v2087_v7 = vpop.permute.xlu1 %917  ;;  %v911_v17 = vmul.f32 %v1613_v62, %v875_v60 }
 0x102   : >> { %v925_v12 = vmul.f32 %v923_v47, %v2087_v7  ;;  %v1060_v7 = vmul.f32 %v1059_v22, %v1841_v1  ;;  %v962_v14 = vmul.f32 %v1619_v59, %v926_v50  ;;  %v1116_v41 = vmul.f32 1.442695, %v1113_v46 }
 0x103   : >> { %v784_v47 = vadd.f32 %v783_v42, %v782_v28 }
 0x104   : >> { %v927_v6 = vadd.f32 %v925_v12, %v911_v17  ;;  %v1062_v39 = vmul.f32 1.442695, %v1060_v7 }
 0x105   : >> { %v934_v20 = vpop.permute.xlu0 %933  ;;  %v1623_v35 = vpop.eup %1622  ;;  %v785_v7 = vrot.slane %v784_v47, 4 }
 0x106   : >> { %v2094_v23 = vpop.permute.xlu1 %969  ;;  %v963_v18 = vmul.f32 %v1617_v15, %v927_v6  ;;  %1624 = vpow2.f32 %v1062_v39 }
 0x107   : >> { %v977_v24 = vmul.f32 %v975_v25, %v2094_v23  ;;  %v1027_v23 = vrot.slane %v2083_v0, %v1006_v36  ;;  %1626 = vpow2.f32 %v1064_v33 }
 0x108   : >> { %1628 = vpow2.f32 %v1116_v41 }
 0x109   : >> { %v979_v44 = vadd.f32 %v977_v24, %v963_v18 }
 0x10a   : >> { %v966_v32 = vpop.permute.xlu0 %965 }
 0x10b   : >> { %v2105_v21 = vpop.permute.xlu1 %825  ;;  %v976_v30 = vmul.f32 %v975_v25, %v966_v32  ;;  %v1015_v45 = vmul.f32 %v1621_v49, %v979_v44 }
 0x10c   : >> { %v832_v40 = vmul.f32 %v2105_v21, %v822_v52  ;;  %v884_v21 = vmul.f32 %v878_v61, %v874_v19 }
 0x10d   : >> { %v978_v55 = vadd.f32 %v976_v30, %v962_v14 }
 0x10e   : >> { %v834_v52 = vsel %vm666_vm1, %v832_v40, 0.0  ;;  %v982_v36 = vpop.permute.xlu0 %981  ;;  %v886_v12 = vsel %vm666_vm1, %v884_v21, 0.0 }
 0x10f   : >> { %v836_v61 = vadd.f32 %v835_v5, %v834_v52  ;;  %v988_v17 = vmul.f32 %v982_v36, %v978_v55  ;;  %v1014_v57 = vmul.f32 %v1623_v35, %v978_v55 }
 0x110   : >> { %v2114_v31 = vpop.permute.xlu1 %1017  ;;  %v1625_v32 = vpop.eup %1624 }
 0x111   : >> { %v1028_v10 = vmul.f32 %v1027_v23, %v2114_v31  ;;  %v837_v15 = vrot.slane %v836_v61, 4  ;;  %v990_v18 = vsel %vm666_vm1, %v988_v17, 0.0  ;;  %v1627_v39 = vpop.eup %1626 }
 0x112   : >> { %v1629_v52 = vpop.eup %1628 }
 0x113   : >> { %v1038_v19 = vpop.permute.xlu0 %1037  ;;  %v1030_v27 = vadd.f32 %v1028_v10, %v1014_v57  ;;  %v838_v63 = vadd.f32 %v837_v15, %v836_v61 }
 0x114   : >> { %v1022_v56 = vpop.permute.xlu1 %1021 }
 0x115   : >> { %v1029_v58 = vmul.f32 %v1027_v23, %v1022_v56  ;;  %v786_v23 = vadd.f32 %v785_v7, %v784_v47 }
 0x117   : >> { %v1031_v8 = vadd.f32 %v1029_v58, %v1015_v45  ;;  %v1066_v58 = vmul.f32 %v1625_v32, %v1030_v27  ;;  %v787_v36 = vrot.slane %v786_v23, 2 }
 0x118   : >> { %v1086_v35 = vpop.permute.xlu0 %1085 }
 0x119   : >> { %v882_v11 = vpop.permute.xlu1 %881  ;;  %v1041_v31 = vmul.f32 %v1038_v19, %v1031_v8  ;;  %v788_v47 = vadd.f32 %v787_v36, %v786_v23 }
 0x11a   : >> { %v885_v54 = vmul.f32 %v882_v11, %v875_v60  ;;  %v937_v60 = vmul.f32 %v934_v20, %v927_v6  ;;  %v1114_v6 = vmul.f32 1.442695, %v1112_v4 }
 0x11b   : >> { %v1043_v30 = vsel %vm666_vm1, %v1041_v31, 0.0 }
 0x11c   : >> { %v887_v56 = vsel %vm666_vm1, %v885_v54, 0.0  ;;  %1630 = vpow2.f32 %v1114_v6  ;;  %v1067_v54 = vmul.f32 %v1627_v39, %v1031_v8 }
 0x11d   : >> { %v888_v25 = vadd.f32 %v887_v56, %v886_v12 }
 0x11e   : >> { %v930_v26 = vpop.permute.xlu1 %929 }
 0x11f   : >> { %v936_v62 = vmul.f32 %v930_v26, %v926_v50  ;;  %v939_v26 = vsel %vm666_vm1, %v937_v60, 0.0  ;;  %v889_v16 = vrot.slane %v888_v25, 4  ;;  %v1079_v50 = vrot.slane %v2083_v0, %v1058_v48 }
 0x120   : >> { %v839_v48 = vrot.slane %v838_v63, 2 }
 0x121   : >> { %v938_v9 = vsel %vm666_vm1, %v936_v62, 0.0  ;;  %v890_v49 = vadd.f32 %v889_v16, %v888_v25  ;;  %v1131_v62 = vrot.slane %v2083_v0, %v1110_v29  ;;  %v789_v25 = vrot.slane %v788_v47, 1 }
 0x122   : >> { %v940_v53 = vadd.f32 %v939_v26, %v938_v9  ;;  %v840_v28 = vadd.f32 %v839_v48, %v838_v63 }
 0x123   : >> { %v2133_v37 = vpop.permute.xlu1 %1069  ;;  %v891_v45 = vrot.slane %v890_v49, 2  ;;  %v790_v39 = vadd.f32 %v789_v25, %v788_v47 }
 0x124   : >> { %v941_v40 = vrot.slane %v940_v53, 4  ;;  %v1080_v51 = vmul.f32 %v1079_v50, %v2133_v37  ;;  %v841_v0 = vrot.slane %v840_v28, 1 }
 0x125   : >> { %v892_v10 = vadd.f32 %v891_v45, %v890_v49 }
 0x126   : >> { %v942_v42 = vadd.f32 %v941_v40, %v940_v53  ;;  %v1631_v56 = vpop.eup %1630 }
 0x127   : >> { %v1074_v34 = vpop.permute.xlu1 %1073 }
 0x128   : >> { %v1081_v33 = vmul.f32 %v1079_v50, %v1074_v34  ;;  %v1082_v34 = vadd.f32 %v1080_v51, %v1066_v58  ;;  %v943_v5 = vrot.slane %v942_v42, 2 }
 0x12a   : >> { %v1083_v55 = vadd.f32 %v1081_v33, %v1067_v54  ;;  %v1092_v8 = vmul.f32 %v1086_v35, %v1082_v34  ;;  %v944_v29 = vadd.f32 %v943_v5, %v942_v42  ;;  %v1118_v26 = vmul.f32 %v1631_v56, %v1082_v34 }
 0x12c   : >> { %v986_v11 = vpop.permute.xlu1 %985  ;;  %v1119_v61 = vmul.f32 %v1629_v52, %v1083_v55  ;;  %v1094_v6 = vsel %vm666_vm1, %v1092_v8, 0.0 }
 0x12d   : >> { %v989_v22 = vmul.f32 %v986_v11, %v979_v44 }
 0x12f   : >> { %v991_v20 = vsel %vm666_vm1, %v989_v22, 0.0  ;;  %v1142_v22 = vpop.permute.xlu0 %1141 }
 0x130   : >> { %v992_v59 = vadd.f32 %v991_v20, %v990_v18  ;;  %v893_v20 = vrot.slane %v892_v10, 1 }
 0x131   : >> { %v1034_v24 = vpop.permute.xlu1 %1033 }
 0x132   : >> { %v1040_v38 = vmul.f32 %v1034_v24, %v1030_v27  ;;  %v993_v43 = vrot.slane %v992_v59, 4  ;;  %v945_v24 = vrot.slane %v944_v29, 1  ;;  %v894_v63 = vadd.f32 %v893_v20, %v892_v10 }
 0x134   : >> { %v1042_v44 = vsel %vm666_vm1, %v1040_v38, 0.0  ;;  %v994_v4 = vadd.f32 %v993_v43, %v992_v59  ;;  %v946_v33 = vadd.f32 %v945_v24, %v944_v29  ;;  %v794_v43 = vsel %vm791_vm4, %v790_v39, 0.0 }
 0x135   : >> { %v1044_v46 = vadd.f32 %v1043_v30, %v1042_v44 }
 0x136   : >> { %v1122_v14 = vpop.permute.xlu1 %1121  ;;  %v995_v11 = vrot.slane %v994_v4, 2 }
 0x137   : >> { %v1045_v21 = vrot.slane %v1044_v46, 4  ;;  %v1132_v12 = vmul.f32 %v1131_v62, %v1122_v14  ;;  %v898_v14 = vsel %vm895_vm5, %v894_v63, 0.0 }
 0x138   : >> { %v996_v15 = vadd.f32 %v995_v11, %v994_v4 }
 0x139   : >> { %v1046_v60 = vadd.f32 %v1045_v21, %v1044_v46  ;;  %v2172_v50 = vadd.f32 %v1132_v12, %v1118_v26   ;;  %v950_v21 = vsel %vm947_vm6, %v946_v33, 0.0 }
 0x13a   : >> { %v1126_v41 = vpop.permute.xlu1 %1125  ;;  %v997_v30 = vrot.slane %v996_v15, 1 }
 0x13b   : >> { %v1133_v37 = vmul.f32 %v1131_v62, %v1126_v41  ;;  %v1047_v9 = vrot.slane %v1046_v60, 2  ;;  %v2246_v18 = vmov %v2172_v50 }
 0x13c   : >> { %v998_v54 = vadd.f32 %v997_v30, %v996_v15  ;;  %1170 = vst.msk [vmem:[#allocation2] sm:$0xff] (%p721_p10), %vm666_vm1, %v2246_v18 }
 0x13d   : >> { %v2167_v53 = vadd.f32 %v1133_v37, %v1119_v61   ;;  %v1048_v32 = vadd.f32 %v1047_v9, %v1046_v60  ;;  %v733_v60 = vld [vmem:[%s732_s30] sm:$0xff] }
 0x13e   : >> { %v1002_v45 = vsel %vm999_vm7, %v998_v54, 0.0  ;;  %v1166_v8 = vmul.f32 %v1845_v3, %v733_v60 }
 0x13f   : >> { %v2245_v17 = vmov %v2167_v53  ;;  %v1090_v19 = vpop.permute.xlu1 %1089  ;;  %v842_v53 = vadd.f32 %v841_v0, %v840_v28  ;;  %v1049_v46 = vrot.slane %v1048_v32, 1 }
 0x140   : >> { %v1093_v57 = vmul.f32 %v1090_v19, %v1083_v55  ;;  %v1145_v31 = vmul.f32 %v1142_v22, %v2245_v17  ;;  %1171 = vst.msk [vmem:[#allocation2 + $0x8] sm:$0xff] (%p721_p10), %vm666_vm1, %v2245_v17 }
 0x141   : >> { %v846_v23 = vsel %vm843_vm3, %v842_v53, 0.0  ;;  %v1050_v52 = vadd.f32 %v1049_v46, %v1048_v32  ;;  %v2247_v53 = vmov %v2245_v17 }
 0x142   : >> { %v1095_v27 = vsel %vm666_vm1, %v1093_v57, 0.0  ;;  %v1147_v40 = vsel %vm666_vm1, %v1145_v31, 0.0  ;;  %v847_v42 = vadd.f32 %v846_v23, %v794_v43 }
 0x143   : >> { %v1096_v7 = vadd.f32 %v1095_v27, %v1094_v6  ;;  %v1054_v35 = vsel %vm1051_vm8, %v1050_v52, 0.0 }
 0x144   : >> { %v1138_v16 = vpop.permute.xlu1 %1137  ;;  %v899_v55 = vadd.f32 %v898_v14, %v847_v42 }
 0x145   : >> { %v1097_v59 = vrot.slane %v1096_v7, 4  ;;  %v1144_v38 = vmul.f32 %v1138_v16, %v2246_v18 }
 0x146   : >> { %v951_v4 = vadd.f32 %v950_v21, %v899_v55 }
 0x147   : >> { %v1098_v44 = vadd.f32 %v1097_v59, %v1096_v7  ;;  %v1146_v50 = vsel %vm666_vm1, %v1144_v38, 0.0 }
 0x148   : >> { %v1148_v49 = vadd.f32 %v1147_v40, %v1146_v50  ;;  %v1003_v28 = vadd.f32 %v1002_v45, %v951_v4  ;;  %v2248_v50 = vmov %v2246_v18 }
 0x149   : >> { %v1099_v51 = vrot.slane %v1098_v44, 2 }
 0x14a   : >> { %v1149_v48 = vrot.slane %v1148_v49, 4  ;;  %v1055_v47 = vadd.f32 %v1054_v35, %v1003_v28 }
 0x14b   : >> { %v1100_v58 = vadd.f32 %v1099_v51, %v1098_v44 }
 0x14c   : >> { %v1150_v36 = vadd.f32 %v1149_v48, %v1148_v49 }
 0x14d   : >> { %v1101_v62 = vrot.slane %v1100_v58, 1 }
 0x14e   : >> { %v1151_v34 = vrot.slane %v1150_v36, 2 }
 0x14f   : >> { %v1102_v41 = vadd.f32 %v1101_v62, %v1100_v58 }
 0x150   : >> { %v1152_v37 = vadd.f32 %v1151_v34, %v1150_v36 }
 0x151   : >> { %v1106_v5 = vsel %vm1103_vm9, %v1102_v41, 0.0 }
 0x152   : >> { %v1153_v56 = vrot.slane %v1152_v37, 1  ;;  %v1107_v10 = vadd.f32 %v1106_v5, %v1055_v47 }
 0x154   : >> { %v1154_v61 = vadd.f32 %v1153_v56, %v1152_v37 }
 0x155   : > { %723 = sbr.rel (!%p721_p10) target bundleno = 104 (0x68), region = 105 }
 0x156   : >> { %v1158_v11 = vsel %vm1155_vm10, %v1154_v61, 0.0 }
 0x157   : >> { %v1159_v12 = vadd.f32 %v1158_v11, %v1107_v10 }
 0x159   : >> { %v1167_v19 = vadd.f32 %v1166_v8, %v1159_v12 }
 0x15b   : >> { %1169 = vst.msk [vmem:[%s1168_s10] sm:$0xff] %vm666_vm1, %v1167_v19 }
 0x15c PF: > { %s16_s27 = sadd.s32 1, %s1698_s27   ;;  %s2249_s23 = sld [smem:[#allocation5_spill]] }
 0x15d   : > { %p13_p11 = scmp.ge.s32.totalorder %s16_s27, 18   ;;  %s2250_s12 = sld [smem:[#allocation6_spill]] }
 0x15e   : > { %s2251_s11 = sld [smem:[#allocation7_spill]]  ;;  %s2252_s26 = sld [smem:[#allocation8_spill]] }
 0x15f   : > { %s2253_s21 = smov %s1686_s24  ;;  %s2254_s22 = smov %s1690_s25 }
 0x160   :  { %15 = sbr.rel (!%p13_p11) target bundleno = 5 (0x5), region = 116 }
 0x163   : > { %s2255_s24 = smov %s2250_s12 }
 0x164   : > { %s2256_s25 = smov %s2251_s11 }

</bundles_post_ra>
